<compile_context>
chip_gen: v7x
topology: tpu7x:2x2x1
jax: 0.10.0
libtpu: 0.0.40
codegen_flags: <defaults>
</compile_context>

<pallas_src>
from functools import partial

import jax
import jax.numpy as jnp
from jax.experimental import pallas as pl
from jax.experimental.pallas import tpu as pltpu


# ---------------------------------------------------------------------------
# Pallas kernel: fused classifier head on pooled resnet features
# ---------------------------------------------------------------------------
def _head_kernel(x_ref, wa_ref, ba_ref, wb_ref, bb_ref, wc_ref, bc_ref,
                 out_ref):
    """x:[tb,2048] bf16 (pooled in wrapper), wa:[2048,500] bf16 (fc@lin1, BN1
    folded), wb:[500,100] bf16 (lin2, BN2 folded), wc:[100,128] f32 (lin3,
    BN3 folded, zero-padded 10->128 output lanes)."""
    # (resnet.fc ∘ Linear1 ∘ BN1) fused -> ReLU   (Dropout = identity, eval)
    h1 = jnp.dot(x_ref[...], wa_ref[...],
                 preferred_element_type=jnp.float32) + ba_ref[...]
    h1 = jnp.maximum(h1, 0.0)
    # (Linear2 ∘ BN2) -> ReLU
    h2 = jnp.dot(h1.astype(jnp.bfloat16), wb_ref[...],
                 preferred_element_type=jnp.float32) + bb_ref[...]
    h2 = jnp.maximum(h2, 0.0)
    # (Linear3 ∘ BN3), lane-dense 128-wide padded logits
    out_ref[...] = jnp.dot(h2, wc_ref[...],
                           preferred_element_type=jnp.float32) + bc_ref[...]


# ---------------------------------------------------------------------------
# Wrapper
# ---------------------------------------------------------------------------
@partial(jax.jit, static_argnames=("tb_cap",))
def gesture_cls_forward(feat_nchw, prep, *, tb_cap=512):
    """feat_nchw: [B, 2048, 7, 7] backbone feature map (f32)."""
    B, C, H, W = feat_nchw.shape
    # resnet101 tail: adaptive global average pool (lane-dense in the wrapper;
    # see header comment for why it is not fused into the kernel for NCHW).
    # Mean in f32, then stream the activations into the kernel as bf16.
    pooled = jnp.mean(feat_nchw.reshape(B, C, H * W), axis=-1)   # [B, 2048]
    pooled = pooled.astype(jnp.bfloat16)

    # Batch tile: tb_cap is a multiple of 8, so tb < B never violates the
    # (8,128) sublane rule; tb == B uses the full-dim exemption.
    tb = B if B <= tb_cap else tb_cap
    grid = (pl.cdiv(B, tb),)

    def batch_spec(shape):
        return pl.BlockSpec(shape, lambda i: (i, 0))

    def resident_spec(shape):
        # Same block index at every grid step -> weight is DMA'd once and
        # stays resident in VMEM for the whole batch sweep (one copy per
        # TensorCore under the "parallel" megacore split).
        return pl.BlockSpec(shape, lambda i: (0, 0))

    in_specs = [
        batch_spec((tb, C)),
        resident_spec(prep["wa"].shape), resident_spec(prep["ba"].shape),
        resident_spec(prep["wb"].shape), resident_spec(prep["bb"].shape),
        resident_spec(prep["wc"].shape), resident_spec(prep["bc"].shape),
    ]

    n_pad = prep["wc"].shape[1]          # 128 (lane-dense padded logits)
    out = pl.pallas_call(
        _head_kernel,
        out_shape=jax.ShapeDtypeStruct((B, n_pad), jnp.float32),
        grid=grid,
        in_specs=in_specs,
        out_specs=batch_spec((tb, n_pad)),
        compiler_params=pltpu.CompilerParams(
            # "parallel": v7x splits the batch axis across its 2 TCs; the
            # batch tiles are fully independent so this is always legal and
            # a no-op on single-TC v5e/v6e.
            dimension_semantics=("parallel",),
            vmem_limit_bytes=32 * 1024 * 1024,   # safe on v7x (64 MiB phys)
        ),
    )(pooled, prep["wa"], prep["ba"], prep["wb"], prep["bb"],
      prep["wc"], prep["bc"])
    return out[:, :10]


# ---------------------------------------------------------------------------
# Parameter construction / glue-side fusion
# ---------------------------------------------------------------------------
def _fold_bn(gamma, beta, mean, var, eps=1e-5):
    scale = gamma / jnp.sqrt(var + eps)
    shift = beta - mean * scale
    return scale, shift


def _make_raw_params(key):
    """Random stand-ins for the PyTorch module's (pretrained) parameters."""
    ks = jax.random.split(key, 7)
    f32 = jnp.float32

    def lin(k, fan_in, fan_out):
        kw, kb = jax.random.split(k)
        w = jax.random.normal(kw, (fan_in, fan_out), f32) * 0.02
        b = jax.random.normal(kb, (fan_out,), f32) * 0.01
        return w, b

    def bn(k, n):
        kg, kb, km, kv = jax.random.split(k, 4)
        return dict(
            gamma=1.0 + 0.1 * jax.random.normal(kg, (n,), f32),
            beta=0.1 * jax.random.normal(kb, (n,), f32),
            mean=0.1 * jax.random.normal(km, (n,), f32),
            var=jax.random.uniform(kv, (n,), f32, minval=0.5, maxval=1.5),
        )

    wfc, bfc = lin(ks[0], 2048, 1000)        # resnet101.fc
    w1, b1 = lin(ks[1], 1000, 500)
    w2, b2 = lin(ks[2], 500, 100)
    w3, b3 = lin(ks[3], 100, 10)
    return dict(wfc=wfc, bfc=bfc,
                w1=w1, b1=b1, bn1=bn(ks[4], 500),
                w2=w2, b2=b2, bn2=bn(ks[5], 100),
                w3=w3, b3=b3, bn3=bn(ks[6], 10))


def _prepare_params(raw):
    """Glue-side fusion: fc@linear1, BN folds, bf16 big weights, lane padding."""
    s1, t1 = _fold_bn(**raw["bn1"])
    s2, t2 = _fold_bn(**raw["bn2"])
    s3, t3 = _fold_bn(**raw["bn3"])

    # No nonlinearity between resnet.fc and Linear(1000,500): fuse them, then
    # fold BN1's scale into the columns and shift into the bias.
    wa = (raw["wfc"] @ raw["w1"]) * s1[None, :]                  # [2048, 500]
    ba = (raw["bfc"] @ raw["w1"] + raw["b1"]) * s1 + t1          # [500]

    wb = raw["w2"] * s2[None, :]                                 # [500, 100]
    bb = raw["b2"] * s2 + t2

    wc = raw["w3"] * s3[None, :]                                 # [100, 10]
    bc = raw["b3"] * s3 + t3

    # Lane-dense final matmul: zero-pad 10 -> 128 output columns so the
    # kernel's output stores are unmasked full vregs.
    n_out, n_pad = wc.shape[1], 128
    wc_p = jnp.zeros((wc.shape[0], n_pad), jnp.float32).at[:, :n_out].set(wc)
    bc_p = jnp.zeros((1, n_pad), jnp.float32).at[0, :n_out].set(bc)

    return dict(
        wa=wa.astype(jnp.bfloat16), ba=ba[None, :].astype(jnp.float32),
        wb=wb.astype(jnp.bfloat16), bb=bb[None, :].astype(jnp.float32),
        wc=wc_p, bc=bc_p,
    )


# ---------------------------------------------------------------------------
# References
# ---------------------------------------------------------------------------
def _reference_original(feat_nchw, raw, eps=1e-5):
    """Full-f32, unfused reference of the original module math (eval mode)."""
    B, C, H, W = feat_nchw.shape
    x = feat_nchw.reshape(B, C, H * W).mean(-1)
    x = x @ raw["wfc"] + raw["bfc"]

    def bn(h, p):
        return (h - p["mean"]) / jnp.sqrt(p["var"] + eps) * p["gamma"] + p["beta"]

    h = jnp.maximum(bn(x @ raw["w1"] + raw["b1"], raw["bn1"]), 0.0)
    h = jnp.maximum(bn(h @ raw["w2"] + raw["b2"], raw["bn2"]), 0.0)
    return bn(h @ raw["w3"] + raw["b3"], raw["bn3"])


def _reference_prepared(feat_nchw, prep):
    """Plain-JAX replica of the exact kernel math (bf16 weights/activations)."""
    B, C, H, W = feat_nchw.shape
    x = feat_nchw.reshape(B, C, H * W).mean(-1).astype(jnp.bfloat16)
    h1 = jnp.maximum(
        jnp.dot(x, prep["wa"], preferred_element_type=jnp.float32) + prep["ba"],
        0.0)
    h2 = jnp.maximum(
        jnp.dot(h1.astype(jnp.bfloat16), prep["wb"],
                preferred_element_type=jnp.float32) + prep["bb"], 0.0)
    logits = jnp.dot(h2, prep["wc"],
                     preferred_element_type=jnp.float32) + prep["bc"]
    return logits[:, :10]


# ---------------------------------------------------------------------------
if __name__ == "__main__":
    key = jax.random.PRNGKey(0)
    k_x, k_p = jax.random.split(key)

    B = 2
    feat = jax.random.normal(k_x, (B, 2048, 7, 7), jnp.float32)
    raw = _make_raw_params(k_p)
    prep = _prepare_params(raw)

    out = gesture_cls_forward(feat, prep)
    out = jax.block_until_ready(out)
    assert out.shape == (B, 10)

    # Tight check vs. a plain-JAX replica of the exact (fused, bf16) kernel math.
    ref_exact = _reference_prepared(feat, prep)
    assert jnp.allclose(out, ref_exact, atol=1e-3, rtol=1e-3)

    # Loose check vs. the full-f32 unfused original module math
    # (bf16 cast of the pre-fused wa shifts results slightly at tight tolerances).
    ref_f32 = _reference_original(feat, raw)
    assert jnp.allclose(out, ref_f32, atol=2e-2, rtol=2e-2)

    # Ragged-batch path: B not a multiple of tb -> last grid block is masked.
    B2 = 10
    feat2 = jax.random.normal(jax.random.PRNGKey(1), (B2, 2048, 7, 7),
                              jnp.float32)
    out2 = jax.block_until_ready(gesture_cls_forward(feat2, prep, tb_cap=8))
    assert out2.shape == (B2, 10)
    assert jnp.allclose(out2, _reference_prepared(feat2, prep),
                        atol=1e-3, rtol=1e-3)

    print("KERNEL_OK")
</pallas_src>

<mosaic_0001>
module attributes {stable_mosaic.version = 11 : i64} {
  func.func @_head_kernel(%arg0: i32, %arg1: memref<2x2048xbf16, #tpu.memory_space<vmem>>, %arg2: memref<2048x500xbf16, #tpu.memory_space<vmem>>, %arg3: memref<1x500xf32, #tpu.memory_space<vmem>>, %arg4: memref<500x100xbf16, #tpu.memory_space<vmem>>, %arg5: memref<1x100xf32, #tpu.memory_space<vmem>>, %arg6: memref<100x128xf32, #tpu.memory_space<vmem>>, %arg7: memref<1x128xf32, #tpu.memory_space<vmem>>, %arg8: memref<2x128xf32, #tpu.memory_space<vmem>>) attributes {dimension_semantics = [#tpu.dimension_semantics<parallel>], iteration_bounds = array<i64: 1>, scalar_prefetch = 0 : i64, scratch_operands = 0 : i64, tpu.core_type = #tpu.core_type<tc>, window_params = [{transform_indices = @transform_0, window_bounds = array<i64: 2, 2048>}, {pipeline_mode = #tpu.pipeline_mode<synchronous>, transform_indices = @transform_1, window_bounds = array<i64: 2048, 500>}, {pipeline_mode = #tpu.pipeline_mode<synchronous>, transform_indices = @transform_2, window_bounds = array<i64: 1, 500>}, {pipeline_mode = #tpu.pipeline_mode<synchronous>, transform_indices = @transform_3, window_bounds = array<i64: 500, 100>}, {pipeline_mode = #tpu.pipeline_mode<synchronous>, transform_indices = @transform_4, window_bounds = array<i64: 1, 100>}, {pipeline_mode = #tpu.pipeline_mode<synchronous>, transform_indices = @transform_5, window_bounds = array<i64: 100, 128>}, {pipeline_mode = #tpu.pipeline_mode<synchronous>, transform_indices = @transform_6, window_bounds = array<i64: 1, 128>}, {transform_indices = @transform_7, window_bounds = array<i64: 2, 128>}]} {
    %c0 = arith.constant 0 : index
    %c0_0 = arith.constant 0 : index
    %0 = vector.load %arg1[%c0, %c0_0] : memref<2x2048xbf16, #tpu.memory_space<vmem>>, vector<2x2048xbf16>
    %c0_1 = arith.constant 0 : index
    %c0_2 = arith.constant 0 : index
    %1 = vector.load %arg2[%c0_1, %c0_2] : memref<2048x500xbf16, #tpu.memory_space<vmem>>, vector<2048x500xbf16>
    %cst = arith.constant dense<0.000000e+00> : vector<2x500xf32>
    %2 = tpu.matmul %0, %1, %cst {dimension_numbers = #tpu.dot_dimension_numbers<[1], [0], [0], [1], [0, 0, 1, 1], [], []>} : vector<2x2048xbf16>, vector<2048x500xbf16>, vector<2x500xf32> -> vector<2x500xf32>
    %c0_3 = arith.constant 0 : index
    %c0_4 = arith.constant 0 : index
    %3 = vector.load %arg3[%c0_3, %c0_4] : memref<1x500xf32, #tpu.memory_space<vmem>>, vector<1x500xf32>
    %4 = vector.broadcast %3 : vector<1x500xf32> to vector<2x500xf32>
    %5 = arith.addf %2, %4 : vector<2x500xf32>
    %cst_5 = arith.constant 0.000000e+00 : f32
    %6 = vector.broadcast %cst_5 : f32 to vector<2x500xf32>
    %7 = arith.maximumf %5, %6 : vector<2x500xf32>
    %8 = arith.truncf %7 : vector<2x500xf32> to vector<2x500xbf16>
    %c0_6 = arith.constant 0 : index
    %c0_7 = arith.constant 0 : index
    %9 = vector.load %arg4[%c0_6, %c0_7] : memref<500x100xbf16, #tpu.memory_space<vmem>>, vector<500x100xbf16>
    %cst_8 = arith.constant dense<0.000000e+00> : vector<2x100xf32>
    %10 = tpu.matmul %8, %9, %cst_8 {dimension_numbers = #tpu.dot_dimension_numbers<[1], [0], [0], [1], [0, 0, 1, 1], [], []>} : vector<2x500xbf16>, vector<500x100xbf16>, vector<2x100xf32> -> vector<2x100xf32>
    %c0_9 = arith.constant 0 : index
    %c0_10 = arith.constant 0 : index
    %11 = vector.load %arg5[%c0_9, %c0_10] : memref<1x100xf32, #tpu.memory_space<vmem>>, vector<1x100xf32>
    %12 = vector.broadcast %11 : vector<1x100xf32> to vector<2x100xf32>
    %13 = arith.addf %10, %12 : vector<2x100xf32>
    %cst_11 = arith.constant 0.000000e+00 : f32
    %14 = vector.broadcast %cst_11 : f32 to vector<2x100xf32>
    %15 = arith.maximumf %13, %14 : vector<2x100xf32>
    %c0_12 = arith.constant 0 : index
    %c0_13 = arith.constant 0 : index
    %16 = vector.load %arg6[%c0_12, %c0_13] : memref<100x128xf32, #tpu.memory_space<vmem>>, vector<100x128xf32>
    %cst_14 = arith.constant dense<0.000000e+00> : vector<2x128xf32>
    %17 = tpu.matmul %15, %16, %cst_14 {dimension_numbers = #tpu.dot_dimension_numbers<[1], [0], [0], [1], [0, 0, 1, 1], [], []>} : vector<2x100xf32>, vector<100x128xf32>, vector<2x128xf32> -> vector<2x128xf32>
    %c0_15 = arith.constant 0 : index
    %c0_16 = arith.constant 0 : index
    %18 = vector.load %arg7[%c0_15, %c0_16] : memref<1x128xf32, #tpu.memory_space<vmem>>, vector<1x128xf32>
    %19 = vector.broadcast %18 : vector<1x128xf32> to vector<2x128xf32>
    %20 = arith.addf %17, %19 : vector<2x128xf32>
    %c0_17 = arith.constant 0 : index
    %c0_18 = arith.constant 0 : index
    %21 = vector.load %arg8[%c0_17, %c0_18] : memref<2x128xf32, #tpu.memory_space<vmem>>, vector<2x128xf32>
    tpu.vector_store %arg8[%c0_17, %c0_18], %20 {strides = array<i32>} : memref<2x128xf32, #tpu.memory_space<vmem>>, vector<2x128xf32>,
    return
  }
  func.func @transform_0(%arg0: i32) -> (i32, i32) {
    %c0_i32 = arith.constant 0 : i32
    %c0_i32_0 = arith.constant 0 : i32
    return %arg0, %c0_i32 : i32, i32
  }
  func.func @transform_1(%arg0: i32) -> (i32, i32) {
    %c0_i32 = arith.constant 0 : i32
    %c0_i32_0 = arith.constant 0 : i32
    %c0_i32_1 = arith.constant 0 : i32
    return %c0_i32, %c0_i32_0 : i32, i32
  }
  func.func @transform_2(%arg0: i32) -> (i32, i32) {
    %c0_i32 = arith.constant 0 : i32
    %c0_i32_0 = arith.constant 0 : i32
    %c0_i32_1 = arith.constant 0 : i32
    return %c0_i32, %c0_i32_0 : i32, i32
  }
  func.func @transform_3(%arg0: i32) -> (i32, i32) {
    %c0_i32 = arith.constant 0 : i32
    %c0_i32_0 = arith.constant 0 : i32
    %c0_i32_1 = arith.constant 0 : i32
    return %c0_i32, %c0_i32_0 : i32, i32
  }
  func.func @transform_4(%arg0: i32) -> (i32, i32) {
    %c0_i32 = arith.constant 0 : i32
    %c0_i32_0 = arith.constant 0 : i32
    %c0_i32_1 = arith.constant 0 : i32
    return %c0_i32, %c0_i32_0 : i32, i32
  }
  func.func @transform_5(%arg0: i32) -> (i32, i32) {
    %c0_i32 = arith.constant 0 : i32
    %c0_i32_0 = arith.constant 0 : i32
    %c0_i32_1 = arith.constant 0 : i32
    return %c0_i32, %c0_i32_0 : i32, i32
  }
  func.func @transform_6(%arg0: i32) -> (i32, i32) {
    %c0_i32 = arith.constant 0 : i32
    %c0_i32_0 = arith.constant 0 : i32
    %c0_i32_1 = arith.constant 0 : i32
    return %c0_i32, %c0_i32_0 : i32, i32
  }
  func.func @transform_7(%arg0: i32) -> (i32, i32) {
    %c0_i32 = arith.constant 0 : i32
    %c0_i32_0 = arith.constant 0 : i32
    return %arg0, %c0_i32 : i32, i32
  }
}

</mosaic_0001>

<bundles_post_ra>
// kernel: gesture_cls_forward.1
= control target key start
LH: loop header
LB: loop body
LE: loop exit
PB: predicated region body
PF: predicated region fallthrough
CT: control target
= control target key end

     0   :  { %v544_v36 = vlaneseq  ;;  %v5911_v37 = vmov 1966171168   ;;  %s7742_s0 = inlined_call_operand.vmem [shape: bf16[2,2048], index: 0, kind: input, shape index: {}]   ;;  %s7743_s1 = inlined_call_operand.vmem [shape: bf16[2048,500], index: 1, kind: input, shape index: {}]   ;;  %s7744_s2 = inlined_call_operand.vmem [shape: f32[1,500], index: 2, kind: input, shape index: {}]   ;;  %s7745_s3 = inlined_call_operand.vmem [shape: bf16[500,100], index: 3, kind: input, shape index: {}]   ;;  %s7746_s4 = inlined_call_operand.vmem [shape: f32[1,100], index: 4, kind: input, shape index: {}]   ;;  %s7747_s5 = inlined_call_operand.vmem [shape: f32[100,128], index: 5, kind: input, shape index: {}]   ;;  %s7748_s6 = inlined_call_operand.vmem [shape: f32[1,128], index: 6, kind: input, shape index: {}]   ;;  %s7749_s7 = inlined_call_operand.hbm [shape: f32[2,128], index: 7, kind: output, shape index: {}]  }
   0x1   :  { %v5085_v0 = vld [vmem:[%s7743_s1 + $0x4] ss:$16 sps:$4 sm:$0xff]   ;;  %v5087_v1 = vld [vmem:[%s7743_s1 + $0xc] ss:$16 sps:$4 sm:$0xff]   ;;  %v5089_v2 = vld [vmem:[%s7743_s1] ss:$16 sps:$4 sm:$0xff]   ;;  %v568_v38 = vunpack.c.l.s4 %v5911_v37 }
   0x2   :  { %3240 = vmatprep.subr.bf16.mxu0 %v5085_v0  ;;  %v5090_v3 = vld [vmem:[%s7743_s1 + $0x8] ss:$16 sps:$4 sm:$0xff]   ;;  %3568 = vmatprep.subr.bf16.mxu1 %v5087_v1  ;;  %v5091_v4 = vld [vmem:[%s7743_s1 + $0x24] ss:$16 sps:$4 sm:$0xff]   ;;  %v5093_v5 = vld [vmem:[%s7743_s1 + $0x2c] ss:$16 sps:$4 sm:$0xff]  }
   0x3   :  { %3241 = vmatpush1.bf16.msra.mxu0 %v5089_v2  ;;  %3569 = vmatpush1.bf16.msra.mxu1 %v5090_v3  ;;  %v5095_v6 = vld [vmem:[%s7743_s1 + $0x20] ss:$16 sps:$4 sm:$0xff]   ;;  %v5096_v7 = vld [vmem:[%s7743_s1 + $0x28] ss:$16 sps:$4 sm:$0xff]   ;;  %v5097_v8 = vld [vmem:[%s7743_s1 + $0x44] ss:$16 sps:$4 sm:$0xff]   ;;  %v569_v43 = vunpack.c.0.s8 %v568_v38 }
   0x4   :  { %3242 = vmatprep.subr.bf16.mxu0 %v5091_v4  ;;  %3570 = vmatprep.subr.bf16.mxu1 %v5093_v5  ;;  %v5099_v9 = vld [vmem:[%s7743_s1 + $0x4c] ss:$16 sps:$4 sm:$0xff]   ;;  %v5101_v10 = vld [vmem:[%s7743_s1 + $0x40] ss:$16 sps:$4 sm:$0xff]   ;;  %v5102_v11 = vld [vmem:[%s7743_s1 + $0x48] ss:$16 sps:$4 sm:$0xff]  }
   0x5   :  { %v5103_v12 = vld [vmem:[%s7743_s1 + $0x64] ss:$16 sps:$4 sm:$0xff]   ;;  %v5105_v13 = vld [vmem:[%s7743_s1 + $0x6c] ss:$16 sps:$4 sm:$0xff]   ;;  %v5107_v14 = vld [vmem:[%s7743_s1 + $0x60] ss:$16 sps:$4 sm:$0xff]  }
   0x6   :  { %v5108_v15 = vld [vmem:[%s7743_s1 + $0x68] ss:$16 sps:$4 sm:$0xff]   ;;  %v5109_v16 = vld [vmem:[%s7743_s1 + $0x84] ss:$16 sps:$4 sm:$0xff]   ;;  %v5111_v17 = vld [vmem:[%s7743_s1 + $0x8c] ss:$16 sps:$4 sm:$0xff]  }
   0x7   :  { %3243 = vmatpush1.bf16.msra.mxu0 %v5095_v6  ;;  %3571 = vmatpush1.bf16.msra.mxu1 %v5096_v7  ;;  %v5113_v18 = vld [vmem:[%s7743_s1 + $0x80] ss:$16 sps:$4 sm:$0xff]   ;;  %v5114_v19 = vld [vmem:[%s7743_s1 + $0x88] ss:$16 sps:$4 sm:$0xff]   ;;  %v5115_v20 = vld [vmem:[%s7743_s1 + $0xa4] ss:$16 sps:$4 sm:$0xff]  }
   0x8   :  { %3244 = vmatprep.subr.bf16.mxu0 %v5097_v8  ;;  %3572 = vmatprep.subr.bf16.mxu1 %v5099_v9  ;;  %v5117_v21 = vld [vmem:[%s7743_s1 + $0xac] ss:$16 sps:$4 sm:$0xff]   ;;  %v5119_v22 = vld [vmem:[%s7743_s1 + $0xa0] ss:$16 sps:$4 sm:$0xff]   ;;  %v5120_v23 = vld [vmem:[%s7743_s1 + $0xa8] ss:$16 sps:$4 sm:$0xff]  }
   0x9   :  { %v5121_v24 = vld [vmem:[%s7743_s1 + $0xc4] ss:$16 sps:$4 sm:$0xff]   ;;  %v5123_v25 = vld [vmem:[%s7743_s1 + $0xcc] ss:$16 sps:$4 sm:$0xff]   ;;  %v5125_v26 = vld [vmem:[%s7743_s1 + $0xc0] ss:$16 sps:$4 sm:$0xff]  }
   0xa   :  { %v5126_v27 = vld [vmem:[%s7743_s1 + $0xc8] ss:$16 sps:$4 sm:$0xff]   ;;  %v5127_v28 = vld [vmem:[%s7743_s1 + $0xe4] ss:$16 sps:$4 sm:$0xff]   ;;  %v5129_v29 = vld [vmem:[%s7743_s1 + $0xec] ss:$16 sps:$4 sm:$0xff]  }
   0xb   :  { %3245 = vmatpush1.bf16.msra.mxu0 %v5101_v10  ;;  %3573 = vmatpush1.bf16.msra.mxu1 %v5102_v11  ;;  %v5131_v30 = vld [vmem:[%s7743_s1 + $0xe0] ss:$16 sps:$4 sm:$0xff]   ;;  %v5132_v31 = vld [vmem:[%s7743_s1 + $0xe8] ss:$16 sps:$4 sm:$0xff]   ;;  %v5133_v32 = vld [vmem:[%s7743_s1 + $0x104] ss:$16 sps:$4 sm:$0xff]  }
   0xc   :  { %3246 = vmatprep.subr.bf16.mxu0 %v5103_v12  ;;  %3574 = vmatprep.subr.bf16.mxu1 %v5105_v13  ;;  %v5135_v33 = vld [vmem:[%s7743_s1 + $0x10c] ss:$16 sps:$4 sm:$0xff]   ;;  %v5137_v34 = vld [vmem:[%s7743_s1 + $0x100] ss:$16 sps:$4 sm:$0xff]   ;;  %v5138_v35 = vld [vmem:[%s7743_s1 + $0x108] ss:$16 sps:$4 sm:$0xff]  }
   0xd   :  { %v5139_v39 = vld [vmem:[%s7743_s1 + $0x124] ss:$16 sps:$4 sm:$0xff]   ;;  %v5141_v40 = vld [vmem:[%s7743_s1 + $0x12c] ss:$16 sps:$4 sm:$0xff]   ;;  %v5143_v41 = vld [vmem:[%s7743_s1 + $0x120] ss:$16 sps:$4 sm:$0xff]  }
   0xe   :  { %v6073_v42 = vshrl.u32 %v544_v36, 7  ;;  %v5144_v44 = vld [vmem:[%s7743_s1 + $0x128] ss:$16 sps:$4 sm:$0xff]   ;;  %v5145_v45 = vld [vmem:[%s7743_s1 + $0x144] ss:$16 sps:$4 sm:$0xff]  }
   0xf   :  { %3247 = vmatpush1.bf16.msra.mxu0 %v5107_v14  ;;  %3575 = vmatpush1.bf16.msra.mxu1 %v5108_v15  ;;  %v5147_v46 = vld [vmem:[%s7743_s1 + $0x14c] ss:$16 sps:$4 sm:$0xff]   ;;  %v5149_v47 = vld [vmem:[%s7743_s1 + $0x140] ss:$16 sps:$4 sm:$0xff]   ;;  %v5150_v48 = vld [vmem:[%s7743_s1 + $0x148] ss:$16 sps:$4 sm:$0xff]  }
  0x10   :  { %3248 = vmatprep.subr.bf16.mxu0 %v5109_v16  ;;  %3576 = vmatprep.subr.bf16.mxu1 %v5111_v17  ;;  %v6091_v49 = vsub.s32 %v569_v43, %v6073_v42  ;;  %v5151_v50 = vld [vmem:[%s7743_s1 + $0x164] ss:$16 sps:$4 sm:$0xff]   ;;  %v5153_v51 = vld [vmem:[%s7743_s1 + $0x16c] ss:$16 sps:$4 sm:$0xff]   ;;  %v5155_v53 = vld [vmem:[%s7743_s1 + $0x160] ss:$16 sps:$4 sm:$0xff]  }
  0x11   :  { %v6102_v52 = vld [vmem:[%s7742_s0] sm:$0xff]  ;;  %v5156_v55 = vld [vmem:[%s7743_s1 + $0x168] ss:$16 sps:$4 sm:$0xff]   ;;  %v5159_v57 = vld [vmem:[%s7743_s1 + $0x18c] ss:$16 sps:$4 sm:$0xff]  }
  0x12   :  { %v573_v54 = vrot.slane %v6102_v52, %v6091_v49  ;;  %v5157_v56 = vld [vmem:[%s7743_s1 + $0x184] ss:$16 sps:$4 sm:$0xff]   ;;  %v5161_v59 = vld [vmem:[%s7743_s1 + $0x180] ss:$16 sps:$4 sm:$0xff]   ;;  %v5162_v61 = vld [vmem:[%s7743_s1 + $0x188] ss:$16 sps:$4 sm:$0xff]  }
  0x13   :  { %3249 = vmatpush1.bf16.msra.mxu0 %v5113_v18  ;;  %3577 = vmatpush1.bf16.msra.mxu1 %v5114_v19  ;;  %v5163_v62 = vld [vmem:[%s7743_s1 + $0x1a4] ss:$16 sps:$4 sm:$0xff]   ;;  %v5165_v63 = vld [vmem:[%s7743_s1 + $0x1ac] ss:$16 sps:$4 sm:$0xff]   ;;  %v5167_v0 = vld [vmem:[%s7743_s1 + $0x1a0] ss:$16 sps:$4 sm:$0xff]  }
  0x14   :  { %3250 = vmatprep.subr.bf16.mxu0 %v5115_v20  ;;  %3578 = vmatprep.subr.bf16.mxu1 %v5117_v21  ;;  %v581_v58 = vcombine.high %v573_v54, %v573_v54  ;;  %v5168_v1 = vld [vmem:[%s7743_s1 + $0x1a8] ss:$16 sps:$4 sm:$0xff]   ;;  %v5169_v2 = vld [vmem:[%s7743_s1 + $0x1c4] ss:$16 sps:$4 sm:$0xff]   ;;  %v5171_v3 = vld [vmem:[%s7743_s1 + $0x1cc] ss:$16 sps:$4 sm:$0xff]   ;;  %v6171_v13 = vrot.slane %v573_v54, %v6091_v49 }
  0x15   :  { %v5173_v4 = vld [vmem:[%s7743_s1 + $0x1c0] ss:$16 sps:$4 sm:$0xff]   ;;  %v5174_v5 = vld [vmem:[%s7743_s1 + $0x1c8] ss:$16 sps:$4 sm:$0xff]   ;;  %v5175_v6 = vld [vmem:[%s7743_s1 + $0x1e4] ss:$16 sps:$4 sm:$0xff]  }
  0x16   :  { %v603_v60 = vrot.slane %v581_v58, %v6091_v49  ;;  %v5177_v7 = vld [vmem:[%s7743_s1 + $0x1ec] ss:$16 sps:$4 sm:$0xff]   ;;  %v5179_v8 = vld [vmem:[%s7743_s1 + $0x1e0] ss:$16 sps:$4 sm:$0xff]   ;;  %v5180_v9 = vld [vmem:[%s7743_s1 + $0x1e8] ss:$16 sps:$4 sm:$0xff]  }
  0x17   :  { %3251 = vmatpush1.bf16.msra.mxu0 %v5119_v22  ;;  %3579 = vmatpush1.bf16.msra.mxu1 %v5120_v23  ;;  %v5183_v10 = vld [vmem:[%s7743_s1 + $0x204] ss:$16 sps:$4 sm:$0xff]   ;;  %v5186_v11 = vld [vmem:[%s7743_s1 + $0x20c] ss:$16 sps:$4 sm:$0xff]   ;;  %v5181_v12 = vld [vmem:[%s7743_s1 + $0x200] ss:$16 sps:$4 sm:$0xff]  }
  0x18   :  { %3252 = vmatprep.subr.bf16.mxu0 %v5121_v24  ;;  %3580 = vmatprep.subr.bf16.mxu1 %v5123_v25  ;;  %v5184_v14 = vld [vmem:[%s7743_s1 + $0x208] ss:$16 sps:$4 sm:$0xff]   ;;  %v5189_v15 = vld [vmem:[%s7743_s1 + $0x224] ss:$16 sps:$4 sm:$0xff]   ;;  %v5192_v16 = vld [vmem:[%s7743_s1 + $0x22c] ss:$16 sps:$4 sm:$0xff]   ;;  %v613_v17 = vcombine.high %v603_v60, %v603_v60 }
  0x19   :  { %3272 = vmatprep.mubr.bf16.mxu0 %v603_v60  ;;  %3600 = vmatprep.mubr.bf16.mxu1 %v603_v60  ;;  %v5187_v18 = vld [vmem:[%s7743_s1 + $0x220] ss:$16 sps:$4 sm:$0xff]   ;;  %v5190_v19 = vld [vmem:[%s7743_s1 + $0x228] ss:$16 sps:$4 sm:$0xff]   ;;  %v5195_v20 = vld [vmem:[%s7743_s1 + $0x244] ss:$16 sps:$4 sm:$0xff]  }
  0x1a   :  { %v5198_v21 = vld [vmem:[%s7743_s1 + $0x24c] ss:$16 sps:$4 sm:$0xff]   ;;  %v5193_v22 = vld [vmem:[%s7743_s1 + $0x240] ss:$16 sps:$4 sm:$0xff]   ;;  %v5196_v23 = vld [vmem:[%s7743_s1 + $0x248] ss:$16 sps:$4 sm:$0xff]  }
  0x1b   :  { %3253 = vmatpush1.bf16.msra.mxu0 %v5125_v26  ;;  %3581 = vmatpush1.bf16.msra.mxu1 %v5126_v27  ;;  %v5201_v24 = vld [vmem:[%s7743_s1 + $0x264] ss:$16 sps:$4 sm:$0xff]   ;;  %v5204_v25 = vld [vmem:[%s7743_s1 + $0x26c] ss:$16 sps:$4 sm:$0xff]   ;;  %v5199_v26 = vld [vmem:[%s7743_s1 + $0x260] ss:$16 sps:$4 sm:$0xff]  }
  0x1c   :  { %3254 = vmatprep.subr.bf16.mxu0 %v5127_v28  ;;  %3582 = vmatprep.subr.bf16.mxu1 %v5129_v29  ;;  %v5202_v27 = vld [vmem:[%s7743_s1 + $0x268] ss:$16 sps:$4 sm:$0xff]   ;;  %v5207_v28 = vld [vmem:[%s7743_s1 + $0x284] ss:$16 sps:$4 sm:$0xff]   ;;  %v5210_v29 = vld [vmem:[%s7743_s1 + $0x28c] ss:$16 sps:$4 sm:$0xff]  }
  0x1d   :  { %v5219_v36 = vld [vmem:[%s7743_s1 + $0x2c4] ss:$16 sps:$4 sm:$0xff]   ;;  %v5222_v37 = vld [vmem:[%s7743_s1 + $0x2cc] ss:$16 sps:$4 sm:$0xff]   ;;  %v5217_v38 = vld [vmem:[%s7743_s1 + $0x2c0] ss:$16 sps:$4 sm:$0xff]  }
  0x1e   :  { %v5223_v43 = vld [vmem:[%s7743_s1 + $0x2e0] ss:$16 sps:$4 sm:$0xff]   ;;  %v5238_v54 = vld [vmem:[%s7743_s1 + $0x328] ss:$16 sps:$4 sm:$0xff]   ;;  %v5252_v60 = vld [vmem:[%s7743_s1 + $0x36c] ss:$16 sps:$4 sm:$0xff]  }
  0x1f   :  { %3255 = vmatpush1.bf16.msra.mxu0 %v5131_v30  ;;  %3583 = vmatpush1.bf16.msra.mxu1 %v5132_v31  ;;  %v5205_v30 = vld [vmem:[%s7743_s1 + $0x280] ss:$16 sps:$4 sm:$0xff]   ;;  %v5208_v31 = vld [vmem:[%s7743_s1 + $0x288] ss:$16 sps:$4 sm:$0xff]  }
  0x20   :  { %3256 = vmatprep.subr.bf16.mxu0 %v5133_v32  ;;  %3584 = vmatprep.subr.bf16.mxu1 %v5135_v33  ;;  %v5213_v32 = vld [vmem:[%s7743_s1 + $0x2a4] ss:$16 sps:$4 sm:$0xff]   ;;  %v5216_v33 = vld [vmem:[%s7743_s1 + $0x2ac] ss:$16 sps:$4 sm:$0xff]   ;;  %v5244_v58 = vld [vmem:[%s7743_s1 + $0x348] ss:$16 sps:$4 sm:$0xff]  }
  0x23   :  { %3257 = vmatpush1.bf16.msra.mxu0 %v5137_v34  ;;  %3585 = vmatpush1.bf16.msra.mxu1 %v5138_v35  ;;  %v5211_v34 = vld [vmem:[%s7743_s1 + $0x2a0] ss:$16 sps:$4 sm:$0xff]   ;;  %v5214_v35 = vld [vmem:[%s7743_s1 + $0x2a8] ss:$16 sps:$4 sm:$0xff]  }
  0x24   :  { %3258 = vmatprep.subr.bf16.mxu0 %v5139_v39  ;;  %3586 = vmatprep.subr.bf16.mxu1 %v5141_v40  ;;  %v5220_v39 = vld [vmem:[%s7743_s1 + $0x2c8] ss:$16 sps:$4 sm:$0xff]   ;;  %v5225_v40 = vld [vmem:[%s7743_s1 + $0x2e4] ss:$16 sps:$4 sm:$0xff]  }
  0x27   :  { %3259 = vmatpush1.bf16.msra.mxu0 %v5143_v41  ;;  %3587 = vmatpush1.bf16.msra.mxu1 %v5144_v44  ;;  %v5228_v41 = vld [vmem:[%s7743_s1 + $0x2ec] ss:$16 sps:$4 sm:$0xff]   ;;  %v5226_v44 = vld [vmem:[%s7743_s1 + $0x2e8] ss:$16 sps:$4 sm:$0xff]  }
  0x28   :  { %3260 = vmatprep.subr.bf16.mxu0 %v5145_v45  ;;  %3588 = vmatprep.subr.bf16.mxu1 %v5147_v46  ;;  %v5231_v45 = vld [vmem:[%s7743_s1 + $0x304] ss:$16 sps:$4 sm:$0xff]   ;;  %v5234_v46 = vld [vmem:[%s7743_s1 + $0x30c] ss:$16 sps:$4 sm:$0xff]  }
  0x2b   :  { %3261 = vmatpush1.bf16.msra.mxu0 %v5149_v47  ;;  %3589 = vmatpush1.bf16.msra.mxu1 %v5150_v48  ;;  %v5229_v47 = vld [vmem:[%s7743_s1 + $0x300] ss:$16 sps:$4 sm:$0xff]   ;;  %v5232_v48 = vld [vmem:[%s7743_s1 + $0x308] ss:$16 sps:$4 sm:$0xff]  }
  0x2c   :  { %3262 = vmatprep.subr.bf16.mxu0 %v5151_v50  ;;  %3590 = vmatprep.subr.bf16.mxu1 %v5153_v51  ;;  %v5237_v50 = vld [vmem:[%s7743_s1 + $0x324] ss:$16 sps:$4 sm:$0xff]   ;;  %v5240_v51 = vld [vmem:[%s7743_s1 + $0x32c] ss:$16 sps:$4 sm:$0xff]  }
  0x2f   :  { %3263 = vmatpush1.bf16.msra.mxu0 %v5155_v53  ;;  %3591 = vmatpush1.bf16.msra.mxu1 %v5156_v55  ;;  %v5235_v53 = vld [vmem:[%s7743_s1 + $0x320] ss:$16 sps:$4 sm:$0xff]   ;;  %v5243_v55 = vld [vmem:[%s7743_s1 + $0x344] ss:$16 sps:$4 sm:$0xff]  }
  0x30   :  { %3264 = vmatprep.subr.bf16.mxu0 %v5157_v56  ;;  %3592 = vmatprep.subr.bf16.mxu1 %v5159_v57  ;;  %v5246_v56 = vld [vmem:[%s7743_s1 + $0x34c] ss:$16 sps:$4 sm:$0xff]   ;;  %v5241_v57 = vld [vmem:[%s7743_s1 + $0x340] ss:$16 sps:$4 sm:$0xff]  }
  0x33   :  { %3265 = vmatpush1.bf16.msra.mxu0 %v5161_v59  ;;  %3593 = vmatpush1.bf16.msra.mxu1 %v5162_v61  ;;  %v5249_v59 = vld [vmem:[%s7743_s1 + $0x364] ss:$16 sps:$4 sm:$0xff]   ;;  %v5247_v61 = vld [vmem:[%s7743_s1 + $0x360] ss:$16 sps:$4 sm:$0xff]  }
  0x34   :  { %3266 = vmatprep.subr.bf16.mxu0 %v5163_v62  ;;  %3594 = vmatprep.subr.bf16.mxu1 %v5165_v63  ;;  %v5250_v62 = vld [vmem:[%s7743_s1 + $0x368] ss:$16 sps:$4 sm:$0xff]   ;;  %v5255_v63 = vld [vmem:[%s7743_s1 + $0x384] ss:$16 sps:$4 sm:$0xff]  }
  0x37   :  { %3267 = vmatpush1.bf16.msra.mxu0 %v5167_v0  ;;  %3595 = vmatpush1.bf16.msra.mxu1 %v5168_v1  ;;  %v5258_v0 = vld [vmem:[%s7743_s1 + $0x38c] ss:$16 sps:$4 sm:$0xff]   ;;  %v5253_v1 = vld [vmem:[%s7743_s1 + $0x380] ss:$16 sps:$4 sm:$0xff]  }
  0x38   :  { %3268 = vmatprep.subr.bf16.mxu0 %v5169_v2  ;;  %3596 = vmatprep.subr.bf16.mxu1 %v5171_v3  ;;  %v5256_v2 = vld [vmem:[%s7743_s1 + $0x388] ss:$16 sps:$4 sm:$0xff]   ;;  %v5261_v3 = vld [vmem:[%s7743_s1 + $0x3a4] ss:$16 sps:$4 sm:$0xff]  }
  0x3b   :  { %3269 = vmatpush1.bf16.msra.mxu0 %v5173_v4  ;;  %3597 = vmatpush1.bf16.msra.mxu1 %v5174_v5  ;;  %v5264_v4 = vld [vmem:[%s7743_s1 + $0x3ac] ss:$16 sps:$4 sm:$0xff]   ;;  %v5259_v5 = vld [vmem:[%s7743_s1 + $0x3a0] ss:$16 sps:$4 sm:$0xff]  }
  0x3c   :  { %3270 = vmatprep.subr.bf16.mxu0 %v5175_v6  ;;  %3598 = vmatprep.subr.bf16.mxu1 %v5177_v7  ;;  %v5262_v6 = vld [vmem:[%s7743_s1 + $0x3a8] ss:$16 sps:$4 sm:$0xff]   ;;  %v5267_v7 = vld [vmem:[%s7743_s1 + $0x3c4] ss:$16 sps:$4 sm:$0xff]  }
  0x3f   :  { %3271 = vmatpush1.bf16.msra.mxu0 %v5179_v8  ;;  %3599 = vmatpush1.bf16.msra.mxu1 %v5180_v9  ;;  %v5270_v8 = vld [vmem:[%s7743_s1 + $0x3cc] ss:$16 sps:$4 sm:$0xff]   ;;  %v566_v9 = vcombine.high %v6102_v52, %v6102_v52 }
  0x40   :  { %3281 = vmatprep.subr.bf16.mxu0 %v5183_v10  ;;  %3609 = vmatprep.subr.bf16.mxu1 %v5186_v11  ;;  %v5265_v10 = vld [vmem:[%s7743_s1 + $0x3c0] ss:$16 sps:$4 sm:$0xff]   ;;  %v5268_v11 = vld [vmem:[%s7743_s1 + $0x3c8] ss:$16 sps:$4 sm:$0xff]   ;;  %v5276_v52 = vld [vmem:[%s7743_s1 + $0x3ec] ss:$16 sps:$4 sm:$0xff]  }
  0x42   :  { %3273 = vmatmul.mubr.bf16.vlgmr.msra.gmra.mrb[0].mxu0 %v6171_v13  ;;  %3601 = vmatmul.mubr.bf16.vlgmr.msra.gmra.mrb[0].mxu1 %v6171_v13 }
  0x43   :  { %3282 = vmatpush1.bf16.msra.mxu0 %v5181_v12  ;;  %3610 = vmatpush1.bf16.msra.mxu1 %v5184_v14  ;;  %v5273_v12 = vld [vmem:[%s7743_s1 + $0x3e4] ss:$16 sps:$4 sm:$0xff]   ;;  %v6355_v14 = vrot.slane %v566_v9, %v6091_v49  ;;  %v5352_v9 = vld [vmem:[%s7743_s1 + $0x588] ss:$16 sps:$4 sm:$0xff]  }
  0x44   :  { %3283 = vmatprep.subr.bf16.mxu0 %v5189_v15  ;;  %3611 = vmatprep.subr.bf16.mxu1 %v5192_v16  ;;  %v5271_v15 = vld [vmem:[%s7743_s1 + $0x3e0] ss:$16 sps:$4 sm:$0xff]   ;;  %v5274_v16 = vld [vmem:[%s7743_s1 + $0x3e8] ss:$16 sps:$4 sm:$0xff]  }
  0x45   :  { %3313 = vmatprep.mubr.bf16.mxu0 %v613_v17  ;;  %3641 = vmatprep.mubr.bf16.mxu1 %v613_v17  ;;  %v5279_v17 = vld [vmem:[%s7743_s1 + $0x404] ss:$16 sps:$4 sm:$0xff]  }
  0x47   :  { %3284 = vmatpush1.bf16.msra.mxu0 %v5187_v18  ;;  %3612 = vmatpush1.bf16.msra.mxu1 %v5190_v19  ;;  %v5282_v18 = vld [vmem:[%s7743_s1 + $0x40c] ss:$16 sps:$4 sm:$0xff]   ;;  %v582_v19 = vcombine.high %v6355_v14, %v6355_v14 }
  0x48   :  { %3285 = vmatprep.subr.bf16.mxu0 %v5195_v20  ;;  %3613 = vmatprep.subr.bf16.mxu1 %v5198_v21  ;;  %v5277_v20 = vld [vmem:[%s7743_s1 + $0x400] ss:$16 sps:$4 sm:$0xff]   ;;  %v611_v21 = vcombine.high %v6171_v13, %v6171_v13 }
  0x49   :  { %v5283_v13 = vld [vmem:[%s7743_s1 + $0x420] ss:$16 sps:$4 sm:$0xff]  }
  0x4b   :  { %3286 = vmatpush1.bf16.msra.mxu0 %v5193_v22  ;;  %3614 = vmatpush1.bf16.msra.mxu1 %v5196_v23  ;;  %v5280_v22 = vld [vmem:[%s7743_s1 + $0x408] ss:$16 sps:$4 sm:$0xff]   ;;  %v5285_v23 = vld [vmem:[%s7743_s1 + $0x424] ss:$16 sps:$4 sm:$0xff]  }
  0x4c   :  { %3287 = vmatprep.subr.bf16.mxu0 %v5201_v24  ;;  %3615 = vmatprep.subr.bf16.mxu1 %v5204_v25  ;;  %v5288_v24 = vld [vmem:[%s7743_s1 + $0x42c] ss:$16 sps:$4 sm:$0xff]   ;;  %v6386_v25 = vrot.slane %v582_v19, %v6091_v49  ;;  %v5369_v19 = vld [vmem:[%s7743_s1 + $0x5e4] ss:$16 sps:$4 sm:$0xff]  }
  0x4f   :  { %3288 = vmatpush1.bf16.msra.mxu0 %v5199_v26  ;;  %3616 = vmatpush1.bf16.msra.mxu1 %v5202_v27  ;;  %v5286_v26 = vld [vmem:[%s7743_s1 + $0x428] ss:$16 sps:$4 sm:$0xff]   ;;  %v5291_v27 = vld [vmem:[%s7743_s1 + $0x444] ss:$16 sps:$4 sm:$0xff]  }
  0x50   :  { %3289 = vmatprep.subr.bf16.mxu0 %v5207_v28  ;;  %3617 = vmatprep.subr.bf16.mxu1 %v5210_v29  ;;  %v5294_v28 = vld [vmem:[%s7743_s1 + $0x44c] ss:$16 sps:$4 sm:$0xff]   ;;  %v5289_v29 = vld [vmem:[%s7743_s1 + $0x440] ss:$16 sps:$4 sm:$0xff]  }
  0x53   :  { %3290 = vmatpush1.bf16.msra.mxu0 %v5205_v30  ;;  %3618 = vmatpush1.bf16.msra.mxu1 %v5208_v31  ;;  %v5292_v30 = vld [vmem:[%s7743_s1 + $0x448] ss:$16 sps:$4 sm:$0xff]   ;;  %v5297_v31 = vld [vmem:[%s7743_s1 + $0x464] ss:$16 sps:$4 sm:$0xff]  }
  0x54   :  { %3291 = vmatprep.subr.bf16.mxu0 %v5213_v32  ;;  %3619 = vmatprep.subr.bf16.mxu1 %v5216_v33  ;;  %v5300_v32 = vld [vmem:[%s7743_s1 + $0x46c] ss:$16 sps:$4 sm:$0xff]   ;;  %v5295_v33 = vld [vmem:[%s7743_s1 + $0x460] ss:$16 sps:$4 sm:$0xff]  }
  0x57   :  { %3292 = vmatpush1.bf16.msra.mxu0 %v5211_v34  ;;  %3620 = vmatpush1.bf16.msra.mxu1 %v5214_v35  ;;  %v5298_v34 = vld [vmem:[%s7743_s1 + $0x468] ss:$16 sps:$4 sm:$0xff]   ;;  %v5303_v35 = vld [vmem:[%s7743_s1 + $0x484] ss:$16 sps:$4 sm:$0xff]  }
  0x58   :  { %3293 = vmatprep.subr.bf16.mxu0 %v5219_v36  ;;  %3621 = vmatprep.subr.bf16.mxu1 %v5222_v37  ;;  %v5306_v36 = vld [vmem:[%s7743_s1 + $0x48c] ss:$16 sps:$4 sm:$0xff]   ;;  %v5301_v37 = vld [vmem:[%s7743_s1 + $0x480] ss:$16 sps:$4 sm:$0xff]  }
  0x5b   :  { %3294 = vmatpush1.bf16.msra.mxu0 %v5217_v38  ;;  %3622 = vmatpush1.bf16.msra.mxu1 %v5220_v39  ;;  %v5304_v38 = vld [vmem:[%s7743_s1 + $0x488] ss:$16 sps:$4 sm:$0xff]   ;;  %v5309_v39 = vld [vmem:[%s7743_s1 + $0x4a4] ss:$16 sps:$4 sm:$0xff]  }
  0x5c   :  { %3295 = vmatprep.subr.bf16.mxu0 %v5225_v40  ;;  %3623 = vmatprep.subr.bf16.mxu1 %v5228_v41  ;;  %v5312_v40 = vld [vmem:[%s7743_s1 + $0x4ac] ss:$16 sps:$4 sm:$0xff]   ;;  %v5307_v41 = vld [vmem:[%s7743_s1 + $0x4a0] ss:$16 sps:$4 sm:$0xff]  }
  0x5f   :  { %3296 = vmatpush1.bf16.msra.mxu0 %v5223_v43  ;;  %3624 = vmatpush1.bf16.msra.mxu1 %v5226_v44  ;;  %v5310_v43 = vld [vmem:[%s7743_s1 + $0x4a8] ss:$16 sps:$4 sm:$0xff]   ;;  %v5315_v44 = vld [vmem:[%s7743_s1 + $0x4c4] ss:$16 sps:$4 sm:$0xff]  }
  0x60   :  { %3297 = vmatprep.subr.bf16.mxu0 %v5231_v45  ;;  %3625 = vmatprep.subr.bf16.mxu1 %v5234_v46  ;;  %v5318_v45 = vld [vmem:[%s7743_s1 + $0x4cc] ss:$16 sps:$4 sm:$0xff]   ;;  %v5313_v46 = vld [vmem:[%s7743_s1 + $0x4c0] ss:$16 sps:$4 sm:$0xff]  }
  0x63   :  { %3298 = vmatpush1.bf16.msra.mxu0 %v5229_v47  ;;  %3626 = vmatpush1.bf16.msra.mxu1 %v5232_v48  ;;  %v5316_v47 = vld [vmem:[%s7743_s1 + $0x4c8] ss:$16 sps:$4 sm:$0xff]   ;;  %v5321_v48 = vld [vmem:[%s7743_s1 + $0x4e4] ss:$16 sps:$4 sm:$0xff]  }
  0x64   :  { %3299 = vmatprep.subr.bf16.mxu0 %v5237_v50  ;;  %3627 = vmatprep.subr.bf16.mxu1 %v5240_v51  ;;  %v5324_v50 = vld [vmem:[%s7743_s1 + $0x4ec] ss:$16 sps:$4 sm:$0xff]   ;;  %v5319_v51 = vld [vmem:[%s7743_s1 + $0x4e0] ss:$16 sps:$4 sm:$0xff]  }
  0x67   :  { %3300 = vmatpush1.bf16.msra.mxu0 %v5235_v53  ;;  %3628 = vmatpush1.bf16.msra.mxu1 %v5238_v54  ;;  %v5322_v53 = vld [vmem:[%s7743_s1 + $0x4e8] ss:$16 sps:$4 sm:$0xff]   ;;  %v5327_v54 = vld [vmem:[%s7743_s1 + $0x504] ss:$16 sps:$4 sm:$0xff]  }
  0x68   :  { %3301 = vmatprep.subr.bf16.mxu0 %v5243_v55  ;;  %3629 = vmatprep.subr.bf16.mxu1 %v5246_v56  ;;  %v5330_v55 = vld [vmem:[%s7743_s1 + $0x50c] ss:$16 sps:$4 sm:$0xff]   ;;  %v5325_v56 = vld [vmem:[%s7743_s1 + $0x500] ss:$16 sps:$4 sm:$0xff]  }
  0x6b   :  { %3302 = vmatpush1.bf16.msra.mxu0 %v5241_v57  ;;  %3630 = vmatpush1.bf16.msra.mxu1 %v5244_v58  ;;  %v5328_v57 = vld [vmem:[%s7743_s1 + $0x508] ss:$16 sps:$4 sm:$0xff]   ;;  %v5333_v58 = vld [vmem:[%s7743_s1 + $0x524] ss:$16 sps:$4 sm:$0xff]  }
  0x6c   :  { %3303 = vmatprep.subr.bf16.mxu0 %v5249_v59  ;;  %3631 = vmatprep.subr.bf16.mxu1 %v5252_v60  ;;  %v5336_v59 = vld [vmem:[%s7743_s1 + $0x52c] ss:$16 sps:$4 sm:$0xff]   ;;  %v5331_v60 = vld [vmem:[%s7743_s1 + $0x520] ss:$16 sps:$4 sm:$0xff]  }
  0x6f   :  { %3304 = vmatpush1.bf16.msra.mxu0 %v5247_v61  ;;  %3632 = vmatpush1.bf16.msra.mxu1 %v5250_v62  ;;  %v5334_v61 = vld [vmem:[%s7743_s1 + $0x528] ss:$16 sps:$4 sm:$0xff]   ;;  %v5339_v62 = vld [vmem:[%s7743_s1 + $0x544] ss:$16 sps:$4 sm:$0xff]  }
  0x70   :  { %3305 = vmatprep.subr.bf16.mxu0 %v5255_v63  ;;  %3633 = vmatprep.subr.bf16.mxu1 %v5258_v0  ;;  %v5342_v63 = vld [vmem:[%s7743_s1 + $0x54c] ss:$16 sps:$4 sm:$0xff]   ;;  %v5337_v0 = vld [vmem:[%s7743_s1 + $0x540] ss:$16 sps:$4 sm:$0xff]  }
  0x73   :  { %3306 = vmatpush1.bf16.msra.mxu0 %v5253_v1  ;;  %3634 = vmatpush1.bf16.msra.mxu1 %v5256_v2  ;;  %v5340_v1 = vld [vmem:[%s7743_s1 + $0x548] ss:$16 sps:$4 sm:$0xff]   ;;  %v5345_v2 = vld [vmem:[%s7743_s1 + $0x564] ss:$16 sps:$4 sm:$0xff]  }
  0x74   :  { %3307 = vmatprep.subr.bf16.mxu0 %v5261_v3  ;;  %3635 = vmatprep.subr.bf16.mxu1 %v5264_v4  ;;  %v5348_v3 = vld [vmem:[%s7743_s1 + $0x56c] ss:$16 sps:$4 sm:$0xff]   ;;  %v5343_v4 = vld [vmem:[%s7743_s1 + $0x560] ss:$16 sps:$4 sm:$0xff]  }
  0x77   :  { %3308 = vmatpush1.bf16.msra.mxu0 %v5259_v5  ;;  %3636 = vmatpush1.bf16.msra.mxu1 %v5262_v6  ;;  %v5346_v5 = vld [vmem:[%s7743_s1 + $0x568] ss:$16 sps:$4 sm:$0xff]   ;;  %v5351_v6 = vld [vmem:[%s7743_s1 + $0x584] ss:$16 sps:$4 sm:$0xff]  }
  0x78   :  { %3309 = vmatprep.subr.bf16.mxu0 %v5267_v7  ;;  %3637 = vmatprep.subr.bf16.mxu1 %v5270_v8  ;;  %v5354_v7 = vld [vmem:[%s7743_s1 + $0x58c] ss:$16 sps:$4 sm:$0xff]   ;;  %v5349_v8 = vld [vmem:[%s7743_s1 + $0x580] ss:$16 sps:$4 sm:$0xff]  }
  0x7b   :  { %3310 = vmatpush1.bf16.msra.mxu0 %v5265_v10  ;;  %3638 = vmatpush1.bf16.msra.mxu1 %v5268_v11  ;;  %v5357_v10 = vld [vmem:[%s7743_s1 + $0x5a4] ss:$16 sps:$4 sm:$0xff]   ;;  %v5360_v11 = vld [vmem:[%s7743_s1 + $0x5ac] ss:$16 sps:$4 sm:$0xff]  }
  0x7c   :  { %3311 = vmatprep.subr.bf16.mxu0 %v5273_v12  ;;  %3639 = vmatprep.subr.bf16.mxu1 %v5276_v52  ;;  %v5355_v12 = vld [vmem:[%s7743_s1 + $0x5a0] ss:$16 sps:$4 sm:$0xff]   ;;  %v5358_v52 = vld [vmem:[%s7743_s1 + $0x5a8] ss:$16 sps:$4 sm:$0xff]  }
  0x7f   :  { %3312 = vmatpush1.bf16.msra.mxu0 %v5271_v15  ;;  %3640 = vmatpush1.bf16.msra.mxu1 %v5274_v16  ;;  %v5363_v15 = vld [vmem:[%s7743_s1 + $0x5c4] ss:$16 sps:$4 sm:$0xff]   ;;  %v5366_v16 = vld [vmem:[%s7743_s1 + $0x5cc] ss:$16 sps:$4 sm:$0xff]  }
  0x80   :  { %3322 = vmatprep.subr.bf16.mxu0 %v5279_v17  ;;  %3650 = vmatprep.subr.bf16.mxu1 %v5282_v18  ;;  %v5361_v17 = vld [vmem:[%s7743_s1 + $0x5c0] ss:$16 sps:$4 sm:$0xff]   ;;  %v5364_v18 = vld [vmem:[%s7743_s1 + $0x5c8] ss:$16 sps:$4 sm:$0xff]  }
  0x82   :  { %3314 = vmatmul.mubr.bf16.vlgmr.msra.gmra.mrb[0].mxu0 %v611_v21  ;;  %3642 = vmatmul.mubr.bf16.vlgmr.msra.gmra.mrb[0].mxu1 %v611_v21  ;;  %v5367_v21 = vld [vmem:[%s7743_s1 + $0x5e0] ss:$16 sps:$4 sm:$0xff]  }
  0x83   :  { %3323 = vmatpush1.bf16.msra.mxu0 %v5277_v20  ;;  %3651 = vmatpush1.bf16.msra.mxu1 %v5280_v22  ;;  %v5372_v20 = vld [vmem:[%s7743_s1 + $0x5ec] ss:$16 sps:$4 sm:$0xff]   ;;  %v5370_v22 = vld [vmem:[%s7743_s1 + $0x5e8] ss:$16 sps:$4 sm:$0xff]  }
  0x84   :  { %3324 = vmatprep.subr.bf16.mxu0 %v5285_v23  ;;  %3652 = vmatprep.subr.bf16.mxu1 %v5288_v24  ;;  %v5376_v23 = vld [vmem:[%s7743_s1 + $0x604] ss:$16 sps:$4 sm:$0xff]   ;;  %v5379_v24 = vld [vmem:[%s7743_s1 + $0x60c] ss:$16 sps:$4 sm:$0xff]  }
  0x85   :  { %3354 = vmatprep.mubr.bf16.mxu0 %v6386_v25  ;;  %3682 = vmatprep.mubr.bf16.mxu1 %v6386_v25 }
  0x87   :  { %3325 = vmatpush1.bf16.msra.mxu0 %v5283_v13  ;;  %3653 = vmatpush1.bf16.msra.mxu1 %v5286_v26  ;;  %v5374_v13 = vld [vmem:[%s7743_s1 + $0x600] ss:$16 sps:$4 sm:$0xff]   ;;  %v6575_v26 = vrot.slane %v6355_v14, %v6091_v49  ;;  %v614_v14 = vcombine.high %v6386_v25, %v6386_v25  ;;  %v5388_v25 = vld [vmem:[%s7743_s1 + $0x644] ss:$16 sps:$4 sm:$0xff]  }
  0x88   :  { %3326 = vmatprep.subr.bf16.mxu0 %v5291_v27  ;;  %3654 = vmatprep.subr.bf16.mxu1 %v5294_v28  ;;  %v5377_v27 = vld [vmem:[%s7743_s1 + $0x608] ss:$16 sps:$4 sm:$0xff]   ;;  %v5382_v28 = vld [vmem:[%s7743_s1 + $0x624] ss:$16 sps:$4 sm:$0xff]  }
  0x8b   :  { %3327 = vmatpush1.bf16.msra.mxu0 %v5289_v29  ;;  %3655 = vmatpush1.bf16.msra.mxu1 %v5292_v30  ;;  %v5385_v29 = vld [vmem:[%s7743_s1 + $0x62c] ss:$16 sps:$4 sm:$0xff]   ;;  %v5380_v30 = vld [vmem:[%s7743_s1 + $0x620] ss:$16 sps:$4 sm:$0xff]  }
  0x8c   :  { %3328 = vmatprep.subr.bf16.mxu0 %v5297_v31  ;;  %3656 = vmatprep.subr.bf16.mxu1 %v5300_v32  ;;  %v5383_v31 = vld [vmem:[%s7743_s1 + $0x628] ss:$16 sps:$4 sm:$0xff]   ;;  %v5391_v32 = vld [vmem:[%s7743_s1 + $0x64c] ss:$16 sps:$4 sm:$0xff]  }
  0x8f   :  { %3329 = vmatpush1.bf16.msra.mxu0 %v5295_v33  ;;  %3657 = vmatpush1.bf16.msra.mxu1 %v5298_v34  ;;  %v5386_v33 = vld [vmem:[%s7743_s1 + $0x640] ss:$16 sps:$4 sm:$0xff]   ;;  %v5389_v34 = vld [vmem:[%s7743_s1 + $0x648] ss:$16 sps:$4 sm:$0xff]  }
  0x90   :  { %3330 = vmatprep.subr.bf16.mxu0 %v5303_v35  ;;  %3658 = vmatprep.subr.bf16.mxu1 %v5306_v36  ;;  %v5394_v35 = vld [vmem:[%s7743_s1 + $0x664] ss:$16 sps:$4 sm:$0xff]   ;;  %v5397_v36 = vld [vmem:[%s7743_s1 + $0x66c] ss:$16 sps:$4 sm:$0xff]  }
  0x93   :  { %3331 = vmatpush1.bf16.msra.mxu0 %v5301_v37  ;;  %3659 = vmatpush1.bf16.msra.mxu1 %v5304_v38  ;;  %v5392_v37 = vld [vmem:[%s7743_s1 + $0x660] ss:$16 sps:$4 sm:$0xff]   ;;  %v5395_v38 = vld [vmem:[%s7743_s1 + $0x668] ss:$16 sps:$4 sm:$0xff]  }
  0x94   :  { %3332 = vmatprep.subr.bf16.mxu0 %v5309_v39  ;;  %3660 = vmatprep.subr.bf16.mxu1 %v5312_v40  ;;  %v5400_v39 = vld [vmem:[%s7743_s1 + $0x684] ss:$16 sps:$4 sm:$0xff]   ;;  %v5403_v40 = vld [vmem:[%s7743_s1 + $0x68c] ss:$16 sps:$4 sm:$0xff]  }
  0x97   :  { %3333 = vmatpush1.bf16.msra.mxu0 %v5307_v41  ;;  %3661 = vmatpush1.bf16.msra.mxu1 %v5310_v43  ;;  %v5398_v41 = vld [vmem:[%s7743_s1 + $0x680] ss:$16 sps:$4 sm:$0xff]   ;;  %v5401_v43 = vld [vmem:[%s7743_s1 + $0x688] ss:$16 sps:$4 sm:$0xff]  }
  0x98   :  { %3334 = vmatprep.subr.bf16.mxu0 %v5315_v44  ;;  %3662 = vmatprep.subr.bf16.mxu1 %v5318_v45  ;;  %v5406_v44 = vld [vmem:[%s7743_s1 + $0x6a4] ss:$16 sps:$4 sm:$0xff]   ;;  %v5409_v45 = vld [vmem:[%s7743_s1 + $0x6ac] ss:$16 sps:$4 sm:$0xff]  }
  0x9b   :  { %3335 = vmatpush1.bf16.msra.mxu0 %v5313_v46  ;;  %3663 = vmatpush1.bf16.msra.mxu1 %v5316_v47  ;;  %v5404_v46 = vld [vmem:[%s7743_s1 + $0x6a0] ss:$16 sps:$4 sm:$0xff]   ;;  %v5407_v47 = vld [vmem:[%s7743_s1 + $0x6a8] ss:$16 sps:$4 sm:$0xff]  }
  0x9c   :  { %3336 = vmatprep.subr.bf16.mxu0 %v5321_v48  ;;  %3664 = vmatprep.subr.bf16.mxu1 %v5324_v50  ;;  %v5412_v48 = vld [vmem:[%s7743_s1 + $0x6c4] ss:$16 sps:$4 sm:$0xff]   ;;  %v5415_v50 = vld [vmem:[%s7743_s1 + $0x6cc] ss:$16 sps:$4 sm:$0xff]  }
  0x9f   :  { %3337 = vmatpush1.bf16.msra.mxu0 %v5319_v51  ;;  %3665 = vmatpush1.bf16.msra.mxu1 %v5322_v53  ;;  %v5410_v51 = vld [vmem:[%s7743_s1 + $0x6c0] ss:$16 sps:$4 sm:$0xff]   ;;  %v5413_v53 = vld [vmem:[%s7743_s1 + $0x6c8] ss:$16 sps:$4 sm:$0xff]  }
  0xa0   :  { %3338 = vmatprep.subr.bf16.mxu0 %v5327_v54  ;;  %3666 = vmatprep.subr.bf16.mxu1 %v5330_v55  ;;  %v5418_v54 = vld [vmem:[%s7743_s1 + $0x6e4] ss:$16 sps:$4 sm:$0xff]   ;;  %v5421_v55 = vld [vmem:[%s7743_s1 + $0x6ec] ss:$16 sps:$4 sm:$0xff]  }
  0xa3   :  { %3339 = vmatpush1.bf16.msra.mxu0 %v5325_v56  ;;  %3667 = vmatpush1.bf16.msra.mxu1 %v5328_v57  ;;  %v5416_v56 = vld [vmem:[%s7743_s1 + $0x6e0] ss:$16 sps:$4 sm:$0xff]   ;;  %v5419_v57 = vld [vmem:[%s7743_s1 + $0x6e8] ss:$16 sps:$4 sm:$0xff]  }
  0xa4   :  { %3340 = vmatprep.subr.bf16.mxu0 %v5333_v58  ;;  %3668 = vmatprep.subr.bf16.mxu1 %v5336_v59  ;;  %v5424_v58 = vld [vmem:[%s7743_s1 + $0x704] ss:$16 sps:$4 sm:$0xff]   ;;  %v5427_v59 = vld [vmem:[%s7743_s1 + $0x70c] ss:$16 sps:$4 sm:$0xff]  }
  0xa7   :  { %3341 = vmatpush1.bf16.msra.mxu0 %v5331_v60  ;;  %3669 = vmatpush1.bf16.msra.mxu1 %v5334_v61  ;;  %v5422_v60 = vld [vmem:[%s7743_s1 + $0x700] ss:$16 sps:$4 sm:$0xff]   ;;  %v5425_v61 = vld [vmem:[%s7743_s1 + $0x708] ss:$16 sps:$4 sm:$0xff]  }
  0xa8   :  { %3342 = vmatprep.subr.bf16.mxu0 %v5339_v62  ;;  %3670 = vmatprep.subr.bf16.mxu1 %v5342_v63  ;;  %v5430_v62 = vld [vmem:[%s7743_s1 + $0x724] ss:$16 sps:$4 sm:$0xff]   ;;  %v5433_v63 = vld [vmem:[%s7743_s1 + $0x72c] ss:$16 sps:$4 sm:$0xff]  }
  0xab   :  { %3343 = vmatpush1.bf16.msra.mxu0 %v5337_v0  ;;  %3671 = vmatpush1.bf16.msra.mxu1 %v5340_v1  ;;  %v5428_v0 = vld [vmem:[%s7743_s1 + $0x720] ss:$16 sps:$4 sm:$0xff]   ;;  %v5431_v1 = vld [vmem:[%s7743_s1 + $0x728] ss:$16 sps:$4 sm:$0xff]  }
  0xac   :  { %3344 = vmatprep.subr.bf16.mxu0 %v5345_v2  ;;  %3672 = vmatprep.subr.bf16.mxu1 %v5348_v3  ;;  %v5436_v2 = vld [vmem:[%s7743_s1 + $0x744] ss:$16 sps:$4 sm:$0xff]   ;;  %v5439_v3 = vld [vmem:[%s7743_s1 + $0x74c] ss:$16 sps:$4 sm:$0xff]  }
  0xaf   :  { %3345 = vmatpush1.bf16.msra.mxu0 %v5343_v4  ;;  %3673 = vmatpush1.bf16.msra.mxu1 %v5346_v5  ;;  %v5434_v4 = vld [vmem:[%s7743_s1 + $0x740] ss:$16 sps:$4 sm:$0xff]   ;;  %v5437_v5 = vld [vmem:[%s7743_s1 + $0x748] ss:$16 sps:$4 sm:$0xff]  }
  0xb0   :  { %3346 = vmatprep.subr.bf16.mxu0 %v5351_v6  ;;  %3674 = vmatprep.subr.bf16.mxu1 %v5354_v7  ;;  %v5442_v6 = vld [vmem:[%s7743_s1 + $0x764] ss:$16 sps:$4 sm:$0xff]   ;;  %v5445_v7 = vld [vmem:[%s7743_s1 + $0x76c] ss:$16 sps:$4 sm:$0xff]  }
  0xb3   :  { %3347 = vmatpush1.bf16.msra.mxu0 %v5349_v8  ;;  %3675 = vmatpush1.bf16.msra.mxu1 %v5352_v9  ;;  %v5440_v8 = vld [vmem:[%s7743_s1 + $0x760] ss:$16 sps:$4 sm:$0xff]   ;;  %v5443_v9 = vld [vmem:[%s7743_s1 + $0x768] ss:$16 sps:$4 sm:$0xff]  }
  0xb4   :  { %3348 = vmatprep.subr.bf16.mxu0 %v5357_v10  ;;  %3676 = vmatprep.subr.bf16.mxu1 %v5360_v11  ;;  %v5448_v10 = vld [vmem:[%s7743_s1 + $0x784] ss:$16 sps:$4 sm:$0xff]   ;;  %v5451_v11 = vld [vmem:[%s7743_s1 + $0x78c] ss:$16 sps:$4 sm:$0xff]  }
  0xb7   :  { %3349 = vmatpush1.bf16.msra.mxu0 %v5355_v12  ;;  %3677 = vmatpush1.bf16.msra.mxu1 %v5358_v52  ;;  %v5446_v12 = vld [vmem:[%s7743_s1 + $0x780] ss:$16 sps:$4 sm:$0xff]   ;;  %v5449_v52 = vld [vmem:[%s7743_s1 + $0x788] ss:$16 sps:$4 sm:$0xff]  }
  0xb8   :  { %3350 = vmatprep.subr.bf16.mxu0 %v5363_v15  ;;  %3678 = vmatprep.subr.bf16.mxu1 %v5366_v16  ;;  %v5454_v15 = vld [vmem:[%s7743_s1 + $0x7a4] ss:$16 sps:$4 sm:$0xff]   ;;  %v5457_v16 = vld [vmem:[%s7743_s1 + $0x7ac] ss:$16 sps:$4 sm:$0xff]  }
  0xbb   :  { %3351 = vmatpush1.bf16.msra.mxu0 %v5361_v17  ;;  %3679 = vmatpush1.bf16.msra.mxu1 %v5364_v18  ;;  %v5452_v17 = vld [vmem:[%s7743_s1 + $0x7a0] ss:$16 sps:$4 sm:$0xff]   ;;  %v5455_v18 = vld [vmem:[%s7743_s1 + $0x7a8] ss:$16 sps:$4 sm:$0xff]  }
  0xbc   :  { %3352 = vmatprep.subr.bf16.mxu0 %v5369_v19  ;;  %3680 = vmatprep.subr.bf16.mxu1 %v5372_v20  ;;  %v5460_v19 = vld [vmem:[%s7743_s1 + $0x7c4] ss:$16 sps:$4 sm:$0xff]   ;;  %v5463_v20 = vld [vmem:[%s7743_s1 + $0x7cc] ss:$16 sps:$4 sm:$0xff]  }
  0xbf   :  { %3353 = vmatpush1.bf16.msra.mxu0 %v5367_v21  ;;  %3681 = vmatpush1.bf16.msra.mxu1 %v5370_v22  ;;  %v6749_v21 = vld [vmem:[%s7742_s0 + $0x8] sm:$0xff]  ;;  %v5458_v22 = vld [vmem:[%s7743_s1 + $0x7c0] ss:$16 sps:$4 sm:$0xff]  }
  0xc0   :  { %3363 = vmatprep.subr.bf16.mxu0 %v5376_v23  ;;  %3691 = vmatprep.subr.bf16.mxu1 %v5379_v24  ;;  %v5461_v23 = vld [vmem:[%s7743_s1 + $0x7c8] ss:$16 sps:$4 sm:$0xff]   ;;  %v5466_v24 = vld [vmem:[%s7743_s1 + $0x7e4] ss:$16 sps:$4 sm:$0xff]  }
  0xc2   :  { %3355 = vmatmul.mubr.bf16.vlgmr.msra.gmra.mrb[0].mxu0 %v6575_v26  ;;  %3683 = vmatmul.mubr.bf16.vlgmr.msra.gmra.mrb[0].mxu1 %v6575_v26 }
  0xc3   :  { %3364 = vmatpush1.bf16.msra.mxu0 %v5374_v13  ;;  %3692 = vmatpush1.bf16.msra.mxu1 %v5377_v27  ;;  %v5469_v13 = vld [vmem:[%s7743_s1 + $0x7ec] ss:$16 sps:$4 sm:$0xff]   ;;  %v6765_v27 = vrot.slane %v6749_v21, %v6091_v49 }
  0xc4   :  { %3365 = vmatprep.subr.bf16.mxu0 %v5382_v28  ;;  %3693 = vmatprep.subr.bf16.mxu1 %v5385_v29  ;;  %v5464_v28 = vld [vmem:[%s7743_s1 + $0x7e0] ss:$16 sps:$4 sm:$0xff]   ;;  %v5467_v29 = vld [vmem:[%s7743_s1 + $0x7e8] ss:$16 sps:$4 sm:$0xff]  }
  0xc5   :  { %3395 = vmatprep.mubr.bf16.mxu0 %v614_v14  ;;  %3723 = vmatprep.mubr.bf16.mxu1 %v614_v14  ;;  %v5472_v14 = vld [vmem:[%s7743_s1 + $0x804] ss:$16 sps:$4 sm:$0xff]  }
  0xc7   :  { %3366 = vmatpush1.bf16.msra.mxu0 %v5380_v30  ;;  %3694 = vmatpush1.bf16.msra.mxu1 %v5383_v31  ;;  %v5475_v30 = vld [vmem:[%s7743_s1 + $0x80c] ss:$16 sps:$4 sm:$0xff]   ;;  %v630_v31 = vcombine.high %v6765_v27, %v6765_v27 }
  0xc8   :  { %3367 = vmatprep.subr.bf16.mxu0 %v5388_v25  ;;  %3695 = vmatprep.subr.bf16.mxu1 %v5391_v32  ;;  %v612_v25 = vcombine.high %v6575_v26, %v6575_v26  ;;  %v5470_v32 = vld [vmem:[%s7743_s1 + $0x800] ss:$16 sps:$4 sm:$0xff]   ;;  %v5481_v26 = vld [vmem:[%s7743_s1 + $0x82c] ss:$16 sps:$4 sm:$0xff]  }
  0xcb   :  { %3368 = vmatpush1.bf16.msra.mxu0 %v5386_v33  ;;  %3696 = vmatpush1.bf16.msra.mxu1 %v5389_v34  ;;  %v5473_v33 = vld [vmem:[%s7743_s1 + $0x808] ss:$16 sps:$4 sm:$0xff]   ;;  %v5478_v34 = vld [vmem:[%s7743_s1 + $0x824] ss:$16 sps:$4 sm:$0xff]  }
  0xcc   :  { %3369 = vmatprep.subr.bf16.mxu0 %v5394_v35  ;;  %3697 = vmatprep.subr.bf16.mxu1 %v5397_v36  ;;  %v6796_v35 = vrot.slane %v630_v31, %v6091_v49  ;;  %v5476_v36 = vld [vmem:[%s7743_s1 + $0x820] ss:$16 sps:$4 sm:$0xff]   ;;  %v5557_v31 = vld [vmem:[%s7743_s1 + $0x9c8] ss:$16 sps:$4 sm:$0xff]  }
  0xcf   :  { %3370 = vmatpush1.bf16.msra.mxu0 %v5392_v37  ;;  %3698 = vmatpush1.bf16.msra.mxu1 %v5395_v38  ;;  %v5479_v37 = vld [vmem:[%s7743_s1 + $0x828] ss:$16 sps:$4 sm:$0xff]   ;;  %v5484_v38 = vld [vmem:[%s7743_s1 + $0x844] ss:$16 sps:$4 sm:$0xff]  }
  0xd0   :  { %3371 = vmatprep.subr.bf16.mxu0 %v5400_v39  ;;  %3699 = vmatprep.subr.bf16.mxu1 %v5403_v40  ;;  %v5487_v39 = vld [vmem:[%s7743_s1 + $0x84c] ss:$16 sps:$4 sm:$0xff]   ;;  %v5482_v40 = vld [vmem:[%s7743_s1 + $0x840] ss:$16 sps:$4 sm:$0xff]  }
  0xd3   :  { %3372 = vmatpush1.bf16.msra.mxu0 %v5398_v41  ;;  %3700 = vmatpush1.bf16.msra.mxu1 %v5401_v43  ;;  %v5485_v41 = vld [vmem:[%s7743_s1 + $0x848] ss:$16 sps:$4 sm:$0xff]   ;;  %v5490_v43 = vld [vmem:[%s7743_s1 + $0x864] ss:$16 sps:$4 sm:$0xff]  }
  0xd4   :  { %3373 = vmatprep.subr.bf16.mxu0 %v5406_v44  ;;  %3701 = vmatprep.subr.bf16.mxu1 %v5409_v45  ;;  %v5493_v44 = vld [vmem:[%s7743_s1 + $0x86c] ss:$16 sps:$4 sm:$0xff]   ;;  %v5488_v45 = vld [vmem:[%s7743_s1 + $0x860] ss:$16 sps:$4 sm:$0xff]  }
  0xd7   :  { %3374 = vmatpush1.bf16.msra.mxu0 %v5404_v46  ;;  %3702 = vmatpush1.bf16.msra.mxu1 %v5407_v47  ;;  %v5491_v46 = vld [vmem:[%s7743_s1 + $0x868] ss:$16 sps:$4 sm:$0xff]   ;;  %v5496_v47 = vld [vmem:[%s7743_s1 + $0x884] ss:$16 sps:$4 sm:$0xff]  }
  0xd8   :  { %3375 = vmatprep.subr.bf16.mxu0 %v5412_v48  ;;  %3703 = vmatprep.subr.bf16.mxu1 %v5415_v50  ;;  %v5499_v48 = vld [vmem:[%s7743_s1 + $0x88c] ss:$16 sps:$4 sm:$0xff]   ;;  %v5494_v50 = vld [vmem:[%s7743_s1 + $0x880] ss:$16 sps:$4 sm:$0xff]  }
  0xdb   :  { %3376 = vmatpush1.bf16.msra.mxu0 %v5410_v51  ;;  %3704 = vmatpush1.bf16.msra.mxu1 %v5413_v53  ;;  %v5497_v51 = vld [vmem:[%s7743_s1 + $0x888] ss:$16 sps:$4 sm:$0xff]   ;;  %v5502_v53 = vld [vmem:[%s7743_s1 + $0x8a4] ss:$16 sps:$4 sm:$0xff]  }
  0xdc   :  { %3377 = vmatprep.subr.bf16.mxu0 %v5418_v54  ;;  %3705 = vmatprep.subr.bf16.mxu1 %v5421_v55  ;;  %v5505_v54 = vld [vmem:[%s7743_s1 + $0x8ac] ss:$16 sps:$4 sm:$0xff]   ;;  %v5500_v55 = vld [vmem:[%s7743_s1 + $0x8a0] ss:$16 sps:$4 sm:$0xff]  }
  0xdf   :  { %3378 = vmatpush1.bf16.msra.mxu0 %v5416_v56  ;;  %3706 = vmatpush1.bf16.msra.mxu1 %v5419_v57  ;;  %v5503_v56 = vld [vmem:[%s7743_s1 + $0x8a8] ss:$16 sps:$4 sm:$0xff]   ;;  %v5508_v57 = vld [vmem:[%s7743_s1 + $0x8c4] ss:$16 sps:$4 sm:$0xff]  }
  0xe0   :  { %3379 = vmatprep.subr.bf16.mxu0 %v5424_v58  ;;  %3707 = vmatprep.subr.bf16.mxu1 %v5427_v59  ;;  %v5511_v58 = vld [vmem:[%s7743_s1 + $0x8cc] ss:$16 sps:$4 sm:$0xff]   ;;  %v5506_v59 = vld [vmem:[%s7743_s1 + $0x8c0] ss:$16 sps:$4 sm:$0xff]  }
  0xe3   :  { %3380 = vmatpush1.bf16.msra.mxu0 %v5422_v60  ;;  %3708 = vmatpush1.bf16.msra.mxu1 %v5425_v61  ;;  %v5509_v60 = vld [vmem:[%s7743_s1 + $0x8c8] ss:$16 sps:$4 sm:$0xff]   ;;  %v5514_v61 = vld [vmem:[%s7743_s1 + $0x8e4] ss:$16 sps:$4 sm:$0xff]  }
  0xe4   :  { %3381 = vmatprep.subr.bf16.mxu0 %v5430_v62  ;;  %3709 = vmatprep.subr.bf16.mxu1 %v5433_v63  ;;  %v5517_v62 = vld [vmem:[%s7743_s1 + $0x8ec] ss:$16 sps:$4 sm:$0xff]   ;;  %v5512_v63 = vld [vmem:[%s7743_s1 + $0x8e0] ss:$16 sps:$4 sm:$0xff]  }
  0xe7   :  { %3382 = vmatpush1.bf16.msra.mxu0 %v5428_v0  ;;  %3710 = vmatpush1.bf16.msra.mxu1 %v5431_v1  ;;  %v5515_v0 = vld [vmem:[%s7743_s1 + $0x8e8] ss:$16 sps:$4 sm:$0xff]   ;;  %v5520_v1 = vld [vmem:[%s7743_s1 + $0x904] ss:$16 sps:$4 sm:$0xff]  }
  0xe8   :  { %3383 = vmatprep.subr.bf16.mxu0 %v5436_v2  ;;  %3711 = vmatprep.subr.bf16.mxu1 %v5439_v3  ;;  %v5523_v2 = vld [vmem:[%s7743_s1 + $0x90c] ss:$16 sps:$4 sm:$0xff]   ;;  %v5518_v3 = vld [vmem:[%s7743_s1 + $0x900] ss:$16 sps:$4 sm:$0xff]  }
  0xeb   :  { %3384 = vmatpush1.bf16.msra.mxu0 %v5434_v4  ;;  %3712 = vmatpush1.bf16.msra.mxu1 %v5437_v5  ;;  %v5521_v4 = vld [vmem:[%s7743_s1 + $0x908] ss:$16 sps:$4 sm:$0xff]   ;;  %v5526_v5 = vld [vmem:[%s7743_s1 + $0x924] ss:$16 sps:$4 sm:$0xff]  }
  0xec   :  { %3385 = vmatprep.subr.bf16.mxu0 %v5442_v6  ;;  %3713 = vmatprep.subr.bf16.mxu1 %v5445_v7  ;;  %v5529_v6 = vld [vmem:[%s7743_s1 + $0x92c] ss:$16 sps:$4 sm:$0xff]   ;;  %v5524_v7 = vld [vmem:[%s7743_s1 + $0x920] ss:$16 sps:$4 sm:$0xff]  }
  0xef   :  { %3386 = vmatpush1.bf16.msra.mxu0 %v5440_v8  ;;  %3714 = vmatpush1.bf16.msra.mxu1 %v5443_v9  ;;  %v5527_v8 = vld [vmem:[%s7743_s1 + $0x928] ss:$16 sps:$4 sm:$0xff]   ;;  %v5532_v9 = vld [vmem:[%s7743_s1 + $0x944] ss:$16 sps:$4 sm:$0xff]  }
  0xf0   :  { %3387 = vmatprep.subr.bf16.mxu0 %v5448_v10  ;;  %3715 = vmatprep.subr.bf16.mxu1 %v5451_v11  ;;  %v5535_v10 = vld [vmem:[%s7743_s1 + $0x94c] ss:$16 sps:$4 sm:$0xff]   ;;  %v5530_v11 = vld [vmem:[%s7743_s1 + $0x940] ss:$16 sps:$4 sm:$0xff]  }
  0xf3   :  { %3388 = vmatpush1.bf16.msra.mxu0 %v5446_v12  ;;  %3716 = vmatpush1.bf16.msra.mxu1 %v5449_v52  ;;  %v5533_v12 = vld [vmem:[%s7743_s1 + $0x948] ss:$16 sps:$4 sm:$0xff]   ;;  %v5538_v52 = vld [vmem:[%s7743_s1 + $0x964] ss:$16 sps:$4 sm:$0xff]  }
  0xf4   :  { %3389 = vmatprep.subr.bf16.mxu0 %v5454_v15  ;;  %3717 = vmatprep.subr.bf16.mxu1 %v5457_v16  ;;  %v5541_v15 = vld [vmem:[%s7743_s1 + $0x96c] ss:$16 sps:$4 sm:$0xff]   ;;  %v5536_v16 = vld [vmem:[%s7743_s1 + $0x960] ss:$16 sps:$4 sm:$0xff]  }
  0xf7   :  { %3390 = vmatpush1.bf16.msra.mxu0 %v5452_v17  ;;  %3718 = vmatpush1.bf16.msra.mxu1 %v5455_v18  ;;  %v5539_v17 = vld [vmem:[%s7743_s1 + $0x968] ss:$16 sps:$4 sm:$0xff]   ;;  %v5544_v18 = vld [vmem:[%s7743_s1 + $0x984] ss:$16 sps:$4 sm:$0xff]  }
  0xf8   :  { %3391 = vmatprep.subr.bf16.mxu0 %v5460_v19  ;;  %3719 = vmatprep.subr.bf16.mxu1 %v5463_v20  ;;  %v5547_v19 = vld [vmem:[%s7743_s1 + $0x98c] ss:$16 sps:$4 sm:$0xff]   ;;  %v5542_v20 = vld [vmem:[%s7743_s1 + $0x980] ss:$16 sps:$4 sm:$0xff]  }
  0xfb   :  { %3392 = vmatpush1.bf16.msra.mxu0 %v5458_v22  ;;  %3720 = vmatpush1.bf16.msra.mxu1 %v5461_v23  ;;  %v5545_v22 = vld [vmem:[%s7743_s1 + $0x988] ss:$16 sps:$4 sm:$0xff]   ;;  %v5550_v23 = vld [vmem:[%s7743_s1 + $0x9a4] ss:$16 sps:$4 sm:$0xff]  }
  0xfc   :  { %3393 = vmatprep.subr.bf16.mxu0 %v5466_v24  ;;  %3721 = vmatprep.subr.bf16.mxu1 %v5469_v13  ;;  %v5553_v24 = vld [vmem:[%s7743_s1 + $0x9ac] ss:$16 sps:$4 sm:$0xff]   ;;  %v5548_v13 = vld [vmem:[%s7743_s1 + $0x9a0] ss:$16 sps:$4 sm:$0xff]  }
  0xff   :  { %3394 = vmatpush1.bf16.msra.mxu0 %v5464_v28  ;;  %3722 = vmatpush1.bf16.msra.mxu1 %v5467_v29  ;;  %v5551_v28 = vld [vmem:[%s7743_s1 + $0x9a8] ss:$16 sps:$4 sm:$0xff]   ;;  %v5556_v29 = vld [vmem:[%s7743_s1 + $0x9c4] ss:$16 sps:$4 sm:$0xff]  }
 0x100   :  { %3404 = vmatprep.subr.bf16.mxu0 %v5472_v14  ;;  %3732 = vmatprep.subr.bf16.mxu1 %v5475_v30  ;;  %v5559_v14 = vld [vmem:[%s7743_s1 + $0x9cc] ss:$16 sps:$4 sm:$0xff]   ;;  %v5554_v30 = vld [vmem:[%s7743_s1 + $0x9c0] ss:$16 sps:$4 sm:$0xff]  }
 0x102   :  { %3396 = vmatmul.mubr.bf16.vlgmr.msra.gmra.mrb[0].mxu0 %v612_v25  ;;  %3724 = vmatmul.mubr.bf16.vlgmr.msra.gmra.mrb[0].mxu1 %v612_v25  ;;  %v5562_v25 = vld [vmem:[%s7743_s1 + $0x9e4] ss:$16 sps:$4 sm:$0xff]  }
 0x103   :  { %3405 = vmatpush1.bf16.msra.mxu0 %v5470_v32  ;;  %3733 = vmatpush1.bf16.msra.mxu1 %v5473_v33  ;;  %v5565_v32 = vld [vmem:[%s7743_s1 + $0x9ec] ss:$16 sps:$4 sm:$0xff]   ;;  %v5560_v33 = vld [vmem:[%s7743_s1 + $0x9e0] ss:$16 sps:$4 sm:$0xff]  }
 0x104   :  { %3406 = vmatprep.subr.bf16.mxu0 %v5478_v34  ;;  %3734 = vmatprep.subr.bf16.mxu1 %v5481_v26  ;;  %v5563_v34 = vld [vmem:[%s7743_s1 + $0x9e8] ss:$16 sps:$4 sm:$0xff]   ;;  %v5568_v26 = vld [vmem:[%s7743_s1 + $0xa04] ss:$16 sps:$4 sm:$0xff]  }
 0x105   :  { %3436 = vmatprep.mubr.bf16.mxu0 %v6796_v35  ;;  %3764 = vmatprep.mubr.bf16.mxu1 %v6796_v35 }
 0x107   :  { %3407 = vmatpush1.bf16.msra.mxu0 %v5476_v36  ;;  %3735 = vmatpush1.bf16.msra.mxu1 %v5479_v37  ;;  %v5571_v36 = vld [vmem:[%s7743_s1 + $0xa0c] ss:$16 sps:$4 sm:$0xff]   ;;  %v6982_v37 = vrot.slane %v6765_v27, %v6091_v49 }
 0x108   :  { %3408 = vmatprep.subr.bf16.mxu0 %v5484_v38  ;;  %3736 = vmatprep.subr.bf16.mxu1 %v5487_v39  ;;  %v5566_v38 = vld [vmem:[%s7743_s1 + $0xa00] ss:$16 sps:$4 sm:$0xff]   ;;  %v5569_v39 = vld [vmem:[%s7743_s1 + $0xa08] ss:$16 sps:$4 sm:$0xff]   ;;  %v5577_v27 = vld [vmem:[%s7743_s1 + $0xa2c] ss:$16 sps:$4 sm:$0xff]  }
 0x10b   :  { %3409 = vmatpush1.bf16.msra.mxu0 %v5482_v40  ;;  %3737 = vmatpush1.bf16.msra.mxu1 %v5485_v41  ;;  %v5574_v40 = vld [vmem:[%s7743_s1 + $0xa24] ss:$16 sps:$4 sm:$0xff]   ;;  %v662_v41 = vcombine.high %v6796_v35, %v6796_v35 }
 0x10c   :  { %3410 = vmatprep.subr.bf16.mxu0 %v5490_v43  ;;  %3738 = vmatprep.subr.bf16.mxu1 %v5493_v44  ;;  %v5572_v43 = vld [vmem:[%s7743_s1 + $0xa20] ss:$16 sps:$4 sm:$0xff]   ;;  %v5575_v44 = vld [vmem:[%s7743_s1 + $0xa28] ss:$16 sps:$4 sm:$0xff]   ;;  %v5580_v35 = vld [vmem:[%s7743_s1 + $0xa44] ss:$16 sps:$4 sm:$0xff]  }
 0x10f   :  { %3411 = vmatpush1.bf16.msra.mxu0 %v5488_v45  ;;  %3739 = vmatpush1.bf16.msra.mxu1 %v5491_v46  ;;  %v5583_v45 = vld [vmem:[%s7743_s1 + $0xa4c] ss:$16 sps:$4 sm:$0xff]   ;;  %v5578_v46 = vld [vmem:[%s7743_s1 + $0xa40] ss:$16 sps:$4 sm:$0xff]  }
 0x110   :  { %3412 = vmatprep.subr.bf16.mxu0 %v5496_v47  ;;  %3740 = vmatprep.subr.bf16.mxu1 %v5499_v48  ;;  %v5581_v47 = vld [vmem:[%s7743_s1 + $0xa48] ss:$16 sps:$4 sm:$0xff]   ;;  %v5586_v48 = vld [vmem:[%s7743_s1 + $0xa64] ss:$16 sps:$4 sm:$0xff]  }
 0x113   :  { %3413 = vmatpush1.bf16.msra.mxu0 %v5494_v50  ;;  %3741 = vmatpush1.bf16.msra.mxu1 %v5497_v51  ;;  %v5589_v50 = vld [vmem:[%s7743_s1 + $0xa6c] ss:$16 sps:$4 sm:$0xff]   ;;  %v5584_v51 = vld [vmem:[%s7743_s1 + $0xa60] ss:$16 sps:$4 sm:$0xff]  }
 0x114   :  { %3414 = vmatprep.subr.bf16.mxu0 %v5502_v53  ;;  %3742 = vmatprep.subr.bf16.mxu1 %v5505_v54  ;;  %v5587_v53 = vld [vmem:[%s7743_s1 + $0xa68] ss:$16 sps:$4 sm:$0xff]   ;;  %v5592_v54 = vld [vmem:[%s7743_s1 + $0xa84] ss:$16 sps:$4 sm:$0xff]  }
 0x117   :  { %3415 = vmatpush1.bf16.msra.mxu0 %v5500_v55  ;;  %3743 = vmatpush1.bf16.msra.mxu1 %v5503_v56  ;;  %v5595_v55 = vld [vmem:[%s7743_s1 + $0xa8c] ss:$16 sps:$4 sm:$0xff]   ;;  %v5590_v56 = vld [vmem:[%s7743_s1 + $0xa80] ss:$16 sps:$4 sm:$0xff]  }
 0x118   :  { %3416 = vmatprep.subr.bf16.mxu0 %v5508_v57  ;;  %3744 = vmatprep.subr.bf16.mxu1 %v5511_v58  ;;  %v5593_v57 = vld [vmem:[%s7743_s1 + $0xa88] ss:$16 sps:$4 sm:$0xff]   ;;  %v5598_v58 = vld [vmem:[%s7743_s1 + $0xaa4] ss:$16 sps:$4 sm:$0xff]  }
 0x11b   :  { %3417 = vmatpush1.bf16.msra.mxu0 %v5506_v59  ;;  %3745 = vmatpush1.bf16.msra.mxu1 %v5509_v60  ;;  %v5601_v59 = vld [vmem:[%s7743_s1 + $0xaac] ss:$16 sps:$4 sm:$0xff]   ;;  %v5596_v60 = vld [vmem:[%s7743_s1 + $0xaa0] ss:$16 sps:$4 sm:$0xff]  }
 0x11c   :  { %3418 = vmatprep.subr.bf16.mxu0 %v5514_v61  ;;  %3746 = vmatprep.subr.bf16.mxu1 %v5517_v62  ;;  %v5599_v61 = vld [vmem:[%s7743_s1 + $0xaa8] ss:$16 sps:$4 sm:$0xff]   ;;  %v5604_v62 = vld [vmem:[%s7743_s1 + $0xac4] ss:$16 sps:$4 sm:$0xff]  }
 0x11f   :  { %3419 = vmatpush1.bf16.msra.mxu0 %v5512_v63  ;;  %3747 = vmatpush1.bf16.msra.mxu1 %v5515_v0  ;;  %v5607_v63 = vld [vmem:[%s7743_s1 + $0xacc] ss:$16 sps:$4 sm:$0xff]   ;;  %v5602_v0 = vld [vmem:[%s7743_s1 + $0xac0] ss:$16 sps:$4 sm:$0xff]  }
 0x120   :  { %3420 = vmatprep.subr.bf16.mxu0 %v5520_v1  ;;  %3748 = vmatprep.subr.bf16.mxu1 %v5523_v2  ;;  %v5605_v1 = vld [vmem:[%s7743_s1 + $0xac8] ss:$16 sps:$4 sm:$0xff]   ;;  %v5610_v2 = vld [vmem:[%s7743_s1 + $0xae4] ss:$16 sps:$4 sm:$0xff]  }
 0x123   :  { %3421 = vmatpush1.bf16.msra.mxu0 %v5518_v3  ;;  %3749 = vmatpush1.bf16.msra.mxu1 %v5521_v4  ;;  %v5613_v3 = vld [vmem:[%s7743_s1 + $0xaec] ss:$16 sps:$4 sm:$0xff]   ;;  %v5608_v4 = vld [vmem:[%s7743_s1 + $0xae0] ss:$16 sps:$4 sm:$0xff]  }
 0x124   :  { %3422 = vmatprep.subr.bf16.mxu0 %v5526_v5  ;;  %3750 = vmatprep.subr.bf16.mxu1 %v5529_v6  ;;  %v5611_v5 = vld [vmem:[%s7743_s1 + $0xae8] ss:$16 sps:$4 sm:$0xff]   ;;  %v5616_v6 = vld [vmem:[%s7743_s1 + $0xb04] ss:$16 sps:$4 sm:$0xff]  }
 0x127   :  { %3423 = vmatpush1.bf16.msra.mxu0 %v5524_v7  ;;  %3751 = vmatpush1.bf16.msra.mxu1 %v5527_v8  ;;  %v5619_v7 = vld [vmem:[%s7743_s1 + $0xb0c] ss:$16 sps:$4 sm:$0xff]   ;;  %v5614_v8 = vld [vmem:[%s7743_s1 + $0xb00] ss:$16 sps:$4 sm:$0xff]  }
 0x128   :  { %3424 = vmatprep.subr.bf16.mxu0 %v5532_v9  ;;  %3752 = vmatprep.subr.bf16.mxu1 %v5535_v10  ;;  %v5617_v9 = vld [vmem:[%s7743_s1 + $0xb08] ss:$16 sps:$4 sm:$0xff]   ;;  %v5622_v10 = vld [vmem:[%s7743_s1 + $0xb24] ss:$16 sps:$4 sm:$0xff]  }
 0x12b   :  { %3425 = vmatpush1.bf16.msra.mxu0 %v5530_v11  ;;  %3753 = vmatpush1.bf16.msra.mxu1 %v5533_v12  ;;  %v5625_v11 = vld [vmem:[%s7743_s1 + $0xb2c] ss:$16 sps:$4 sm:$0xff]  }
 0x12c   :  { %3426 = vmatprep.subr.bf16.mxu0 %v5538_v52  ;;  %3754 = vmatprep.subr.bf16.mxu1 %v5541_v15 }
 0x12f   :  { %3427 = vmatpush1.bf16.msra.mxu0 %v5536_v16  ;;  %3755 = vmatpush1.bf16.msra.mxu1 %v5539_v17 }
 0x130   :  { %3428 = vmatprep.subr.bf16.mxu0 %v5544_v18  ;;  %3756 = vmatprep.subr.bf16.mxu1 %v5547_v19 }
 0x133   :  { %3429 = vmatpush1.bf16.msra.mxu0 %v5542_v20  ;;  %3757 = vmatpush1.bf16.msra.mxu1 %v5545_v22 }
 0x134   :  { %3430 = vmatprep.subr.bf16.mxu0 %v5550_v23  ;;  %3758 = vmatprep.subr.bf16.mxu1 %v5553_v24 }
 0x137   :  { %3431 = vmatpush1.bf16.msra.mxu0 %v5548_v13  ;;  %3759 = vmatpush1.bf16.msra.mxu1 %v5551_v28 }
 0x138   :  { %3432 = vmatprep.subr.bf16.mxu0 %v5556_v29  ;;  %3760 = vmatprep.subr.bf16.mxu1 %v5559_v14 }
 0x13b   :  { %3433 = vmatpush1.bf16.msra.mxu0 %v5554_v30  ;;  %3761 = vmatpush1.bf16.msra.mxu1 %v5557_v31 }
 0x13c   :  { %3434 = vmatprep.subr.bf16.mxu0 %v5562_v25  ;;  %3762 = vmatprep.subr.bf16.mxu1 %v5565_v32 }
 0x13f   :  { %3435 = vmatpush1.bf16.msra.mxu0 %v5560_v33  ;;  %3763 = vmatpush1.bf16.msra.mxu1 %v5563_v34 }
 0x140   :  { %3445 = vmatprep.subr.bf16.mxu0 %v5568_v26  ;;  %3773 = vmatprep.subr.bf16.mxu1 %v5571_v36 }
 0x142   :  { %3437 = vmatmul.mubr.bf16.vlgmr.msra.gmra.mrb[0].mxu0 %v6982_v37  ;;  %3765 = vmatmul.mubr.bf16.vlgmr.msra.gmra.mrb[0].mxu1 %v6982_v37 }
 0x143   :  { %3446 = vmatpush1.bf16.msra.mxu0 %v5566_v38  ;;  %3774 = vmatpush1.bf16.msra.mxu1 %v5569_v39 }
 0x144   :  { %3447 = vmatprep.subr.bf16.mxu0 %v5574_v40  ;;  %3775 = vmatprep.subr.bf16.mxu1 %v5577_v27 }
 0x145   :  { %3477 = vmatprep.mubr.bf16.mxu0 %v662_v41  ;;  %3805 = vmatprep.mubr.bf16.mxu1 %v662_v41 }
 0x147   :  { %3448 = vmatpush1.bf16.msra.mxu0 %v5572_v43  ;;  %3776 = vmatpush1.bf16.msra.mxu1 %v5575_v44 }
 0x148   :  { %3449 = vmatprep.subr.bf16.mxu0 %v5580_v35  ;;  %3777 = vmatprep.subr.bf16.mxu1 %v5583_v45 }
 0x14b   :  { %3450 = vmatpush1.bf16.msra.mxu0 %v5578_v46  ;;  %3778 = vmatpush1.bf16.msra.mxu1 %v5581_v47 }
 0x14c   :  { %3451 = vmatprep.subr.bf16.mxu0 %v5586_v48  ;;  %3779 = vmatprep.subr.bf16.mxu1 %v5589_v50 }
 0x14f   :  { %3452 = vmatpush1.bf16.msra.mxu0 %v5584_v51  ;;  %3780 = vmatpush1.bf16.msra.mxu1 %v5587_v53 }
 0x150   :  { %3453 = vmatprep.subr.bf16.mxu0 %v5592_v54  ;;  %3781 = vmatprep.subr.bf16.mxu1 %v5595_v55 }
 0x153   :  { %3454 = vmatpush1.bf16.msra.mxu0 %v5590_v56  ;;  %3782 = vmatpush1.bf16.msra.mxu1 %v5593_v57 }
 0x154   :  { %3455 = vmatprep.subr.bf16.mxu0 %v5598_v58  ;;  %3783 = vmatprep.subr.bf16.mxu1 %v5601_v59 }
 0x157   :  { %3456 = vmatpush1.bf16.msra.mxu0 %v5596_v60  ;;  %3784 = vmatpush1.bf16.msra.mxu1 %v5599_v61 }
 0x158   :  { %3457 = vmatprep.subr.bf16.mxu0 %v5604_v62  ;;  %3785 = vmatprep.subr.bf16.mxu1 %v5607_v63 }
 0x15b   :  { %3458 = vmatpush1.bf16.msra.mxu0 %v5602_v0  ;;  %3786 = vmatpush1.bf16.msra.mxu1 %v5605_v1 }
 0x15c   :  { %3459 = vmatprep.subr.bf16.mxu0 %v5610_v2  ;;  %3787 = vmatprep.subr.bf16.mxu1 %v5613_v3 }
 0x15f   :  { %3460 = vmatpush1.bf16.msra.mxu0 %v5608_v4  ;;  %3788 = vmatpush1.bf16.msra.mxu1 %v5611_v5 }
 0x160   :  { %3461 = vmatprep.subr.bf16.mxu0 %v5616_v6  ;;  %3789 = vmatprep.subr.bf16.mxu1 %v5619_v7 }
 0x161   :  { %12 = vsyncpa [#allocation3], 0  ;;  %v5620_v12 = vld [vmem:[%s7743_s1 + $0xb20] ss:$16 sps:$4 sm:$0xff]   ;;  %v5623_v52 = vld [vmem:[%s7743_s1 + $0xb28] ss:$16 sps:$4 sm:$0xff]   ;;  %v615_v34 = vcombine.high %v6749_v21, %v6749_v21  ;;  %v660_v35 = vcombine.high %v6982_v37, %v6982_v37 }
 0x162   :  { %v5628_v15 = vld [vmem:[%s7743_s1 + $0xb44] ss:$16 sps:$4 sm:$0xff]   ;;  %v5631_v16 = vld [vmem:[%s7743_s1 + $0xb4c] ss:$16 sps:$4 sm:$0xff]   ;;  %v5626_v17 = vld [vmem:[%s7743_s1 + $0xb40] ss:$16 sps:$4 sm:$0xff]  }
 0x163   :  { %3462 = vmatpush1.bf16.msra.mxu0 %v5614_v8  ;;  %3790 = vmatpush1.bf16.msra.mxu1 %v5617_v9  ;;  %v5629_v18 = vld [vmem:[%s7743_s1 + $0xb48] ss:$16 sps:$4 sm:$0xff]   ;;  %v5634_v19 = vld [vmem:[%s7743_s1 + $0xb64] ss:$16 sps:$4 sm:$0xff]   ;;  %v5637_v20 = vld [vmem:[%s7743_s1 + $0xb6c] ss:$16 sps:$4 sm:$0xff]   ;;  %v7171_v39 = vrot.slane %v615_v34, %v6091_v49 }
 0x164   :  { %3463 = vmatprep.subr.bf16.mxu0 %v5622_v10  ;;  %3791 = vmatprep.subr.bf16.mxu1 %v5625_v11  ;;  %v5632_v22 = vld [vmem:[%s7743_s1 + $0xb60] ss:$16 sps:$4 sm:$0xff]   ;;  %v5635_v23 = vld [vmem:[%s7743_s1 + $0xb68] ss:$16 sps:$4 sm:$0xff]   ;;  %v5640_v24 = vld [vmem:[%s7743_s1 + $0xb84] ss:$16 sps:$4 sm:$0xff]  }
 0x165   :  { %v5643_v13 = vld [vmem:[%s7743_s1 + $0xb8c] ss:$16 sps:$4 sm:$0xff]   ;;  %v5638_v28 = vld [vmem:[%s7743_s1 + $0xb80] ss:$16 sps:$4 sm:$0xff]   ;;  %v5641_v29 = vld [vmem:[%s7743_s1 + $0xb88] ss:$16 sps:$4 sm:$0xff]   ;;  %v631_v44 = vcombine.high %v7171_v39, %v7171_v39 }
 0x166   :  { %v5646_v14 = vld [vmem:[%s7743_s1 + $0xba4] ss:$16 sps:$4 sm:$0xff]   ;;  %v5649_v30 = vld [vmem:[%s7743_s1 + $0xbac] ss:$16 sps:$4 sm:$0xff]   ;;  %v5644_v31 = vld [vmem:[%s7743_s1 + $0xba0] ss:$16 sps:$4 sm:$0xff]  }
 0x167   :  { %3464 = vmatpush1.bf16.msra.mxu0 %v5620_v12  ;;  %3792 = vmatpush1.bf16.msra.mxu1 %v5623_v52  ;;  %v5647_v25 = vld [vmem:[%s7743_s1 + $0xba8] ss:$16 sps:$4 sm:$0xff]   ;;  %v5652_v32 = vld [vmem:[%s7743_s1 + $0xbc4] ss:$16 sps:$4 sm:$0xff]   ;;  %v5655_v33 = vld [vmem:[%s7743_s1 + $0xbcc] ss:$16 sps:$4 sm:$0xff]   ;;  %v7202_v48 = vrot.slane %v631_v44, %v6091_v49 }
 0x168   :  { %3465 = vmatprep.subr.bf16.mxu0 %v5628_v15  ;;  %3793 = vmatprep.subr.bf16.mxu1 %v5631_v16  ;;  %v5650_v26 = vld [vmem:[%s7743_s1 + $0xbc0] ss:$16 sps:$4 sm:$0xff]   ;;  %v5653_v36 = vld [vmem:[%s7743_s1 + $0xbc8] ss:$16 sps:$4 sm:$0xff]   ;;  %v5658_v38 = vld [vmem:[%s7743_s1 + $0xbe4] ss:$16 sps:$4 sm:$0xff]  }
 0x169   :  { %v5661_v21 = vld [vmem:[%s7743_s1 + $0xbec] ss:$16 sps:$4 sm:$0xff]   ;;  %v5656_v40 = vld [vmem:[%s7743_s1 + $0xbe0] ss:$16 sps:$4 sm:$0xff]   ;;  %v5659_v27 = vld [vmem:[%s7743_s1 + $0xbe8] ss:$16 sps:$4 sm:$0xff]  }
 0x16a   :  { %v5664_v41 = vld [vmem:[%s7743_s1 + $0xc04] ss:$16 sps:$4 sm:$0xff]   ;;  %v5667_v43 = vld [vmem:[%s7743_s1 + $0xc0c] ss:$16 sps:$4 sm:$0xff]   ;;  %v5662_v45 = vld [vmem:[%s7743_s1 + $0xc00] ss:$16 sps:$4 sm:$0xff]  }
 0x16b   :  { %3466 = vmatpush1.bf16.msra.mxu0 %v5626_v17  ;;  %3794 = vmatpush1.bf16.msra.mxu1 %v5629_v18  ;;  %v5665_v46 = vld [vmem:[%s7743_s1 + $0xc08] ss:$16 sps:$4 sm:$0xff]   ;;  %v5670_v47 = vld [vmem:[%s7743_s1 + $0xc24] ss:$16 sps:$4 sm:$0xff]   ;;  %v5673_v37 = vld [vmem:[%s7743_s1 + $0xc2c] ss:$16 sps:$4 sm:$0xff]  }
 0x16c   :  { %3467 = vmatprep.subr.bf16.mxu0 %v5634_v19  ;;  %3795 = vmatprep.subr.bf16.mxu1 %v5637_v20  ;;  %v5668_v50 = vld [vmem:[%s7743_s1 + $0xc20] ss:$16 sps:$4 sm:$0xff]   ;;  %v5671_v51 = vld [vmem:[%s7743_s1 + $0xc28] ss:$16 sps:$4 sm:$0xff]   ;;  %v5676_v53 = vld [vmem:[%s7743_s1 + $0xc44] ss:$16 sps:$4 sm:$0xff]  }
 0x16d   :  { %v5679_v54 = vld [vmem:[%s7743_s1 + $0xc4c] ss:$16 sps:$4 sm:$0xff]   ;;  %v5674_v55 = vld [vmem:[%s7743_s1 + $0xc40] ss:$16 sps:$4 sm:$0xff]   ;;  %v5677_v56 = vld [vmem:[%s7743_s1 + $0xc48] ss:$16 sps:$4 sm:$0xff]  }
 0x16e   :  { %v5682_v57 = vld [vmem:[%s7743_s1 + $0xc64] ss:$16 sps:$4 sm:$0xff]   ;;  %v5685_v58 = vld [vmem:[%s7743_s1 + $0xc6c] ss:$16 sps:$4 sm:$0xff]   ;;  %v5680_v59 = vld [vmem:[%s7743_s1 + $0xc60] ss:$16 sps:$4 sm:$0xff]  }
 0x16f   :  { %3468 = vmatpush1.bf16.msra.mxu0 %v5632_v22  ;;  %3796 = vmatpush1.bf16.msra.mxu1 %v5635_v23  ;;  %v5683_v60 = vld [vmem:[%s7743_s1 + $0xc68] ss:$16 sps:$4 sm:$0xff]   ;;  %v5688_v61 = vld [vmem:[%s7743_s1 + $0xc84] ss:$16 sps:$4 sm:$0xff]   ;;  %v5691_v62 = vld [vmem:[%s7743_s1 + $0xc8c] ss:$16 sps:$4 sm:$0xff]  }
 0x170   :  { %3469 = vmatprep.subr.bf16.mxu0 %v5640_v24  ;;  %3797 = vmatprep.subr.bf16.mxu1 %v5643_v13  ;;  %v5686_v63 = vld [vmem:[%s7743_s1 + $0xc80] ss:$16 sps:$4 sm:$0xff]   ;;  %v5689_v0 = vld [vmem:[%s7743_s1 + $0xc88] ss:$16 sps:$4 sm:$0xff]   ;;  %v5694_v1 = vld [vmem:[%s7743_s1 + $0xca4] ss:$16 sps:$4 sm:$0xff]  }
 0x171   :  { %v5697_v2 = vld [vmem:[%s7743_s1 + $0xcac] ss:$16 sps:$4 sm:$0xff]   ;;  %v5692_v3 = vld [vmem:[%s7743_s1 + $0xca0] ss:$16 sps:$4 sm:$0xff]   ;;  %v5695_v4 = vld [vmem:[%s7743_s1 + $0xca8] ss:$16 sps:$4 sm:$0xff]  }
 0x172   :  { %v5700_v5 = vld [vmem:[%s7743_s1 + $0xcc4] ss:$16 sps:$4 sm:$0xff]   ;;  %v5703_v6 = vld [vmem:[%s7743_s1 + $0xccc] ss:$16 sps:$4 sm:$0xff]   ;;  %v5698_v7 = vld [vmem:[%s7743_s1 + $0xcc0] ss:$16 sps:$4 sm:$0xff]  }
 0x173   :  { %3470 = vmatpush1.bf16.msra.mxu0 %v5638_v28  ;;  %3798 = vmatpush1.bf16.msra.mxu1 %v5641_v29  ;;  %v5701_v8 = vld [vmem:[%s7743_s1 + $0xcc8] ss:$16 sps:$4 sm:$0xff]   ;;  %v5706_v9 = vld [vmem:[%s7743_s1 + $0xce4] ss:$16 sps:$4 sm:$0xff]   ;;  %v5709_v10 = vld [vmem:[%s7743_s1 + $0xcec] ss:$16 sps:$4 sm:$0xff]  }
 0x174   :  { %3471 = vmatprep.subr.bf16.mxu0 %v5646_v14  ;;  %3799 = vmatprep.subr.bf16.mxu1 %v5649_v30  ;;  %v5704_v11 = vld [vmem:[%s7743_s1 + $0xce0] ss:$16 sps:$4 sm:$0xff]   ;;  %v5707_v12 = vld [vmem:[%s7743_s1 + $0xce8] ss:$16 sps:$4 sm:$0xff]   ;;  %v5712_v52 = vld [vmem:[%s7743_s1 + $0xd04] ss:$16 sps:$4 sm:$0xff]  }
 0x175   :  { %v5715_v15 = vld [vmem:[%s7743_s1 + $0xd0c] ss:$16 sps:$4 sm:$0xff]   ;;  %v5710_v16 = vld [vmem:[%s7743_s1 + $0xd00] ss:$16 sps:$4 sm:$0xff]   ;;  %v5713_v17 = vld [vmem:[%s7743_s1 + $0xd08] ss:$16 sps:$4 sm:$0xff]  }
 0x176   :  { %v5718_v18 = vld [vmem:[%s7743_s1 + $0xd24] ss:$16 sps:$4 sm:$0xff]   ;;  %v5721_v19 = vld [vmem:[%s7743_s1 + $0xd2c] ss:$16 sps:$4 sm:$0xff]   ;;  %v5716_v20 = vld [vmem:[%s7743_s1 + $0xd20] ss:$16 sps:$4 sm:$0xff]  }
 0x177   :  { %3472 = vmatpush1.bf16.msra.mxu0 %v5644_v31  ;;  %3800 = vmatpush1.bf16.msra.mxu1 %v5647_v25  ;;  %v5719_v22 = vld [vmem:[%s7743_s1 + $0xd28] ss:$16 sps:$4 sm:$0xff]   ;;  %v5724_v23 = vld [vmem:[%s7743_s1 + $0xd44] ss:$16 sps:$4 sm:$0xff]   ;;  %v5727_v24 = vld [vmem:[%s7743_s1 + $0xd4c] ss:$16 sps:$4 sm:$0xff]  }
 0x178   :  { %3473 = vmatprep.subr.bf16.mxu0 %v5652_v32  ;;  %3801 = vmatprep.subr.bf16.mxu1 %v5655_v33  ;;  %v5722_v13 = vld [vmem:[%s7743_s1 + $0xd40] ss:$16 sps:$4 sm:$0xff]   ;;  %v5725_v28 = vld [vmem:[%s7743_s1 + $0xd48] ss:$16 sps:$4 sm:$0xff]   ;;  %v5730_v29 = vld [vmem:[%s7743_s1 + $0xd64] ss:$16 sps:$4 sm:$0xff]  }
 0x179   :  { %v5733_v14 = vld [vmem:[%s7743_s1 + $0xd6c] ss:$16 sps:$4 sm:$0xff]   ;;  %v5728_v30 = vld [vmem:[%s7743_s1 + $0xd60] ss:$16 sps:$4 sm:$0xff]   ;;  %v5731_v31 = vld [vmem:[%s7743_s1 + $0xd68] ss:$16 sps:$4 sm:$0xff]  }
 0x17a   :  { %v5736_v25 = vld [vmem:[%s7743_s1 + $0xd84] ss:$16 sps:$4 sm:$0xff]   ;;  %v5739_v32 = vld [vmem:[%s7743_s1 + $0xd8c] ss:$16 sps:$4 sm:$0xff]   ;;  %v5734_v33 = vld [vmem:[%s7743_s1 + $0xd80] ss:$16 sps:$4 sm:$0xff]  }
 0x17b   :  { %3474 = vmatpush1.bf16.msra.mxu0 %v5650_v26  ;;  %3802 = vmatpush1.bf16.msra.mxu1 %v5653_v36  ;;  %v5737_v34 = vld [vmem:[%s7743_s1 + $0xd88] ss:$16 sps:$4 sm:$0xff]   ;;  %v5742_v26 = vld [vmem:[%s7743_s1 + $0xda4] ss:$16 sps:$4 sm:$0xff]   ;;  %v5745_v36 = vld [vmem:[%s7743_s1 + $0xdac] ss:$16 sps:$4 sm:$0xff]  }
 0x17c   :  { %3475 = vmatprep.subr.bf16.mxu0 %v5658_v38  ;;  %3803 = vmatprep.subr.bf16.mxu1 %v5661_v21  ;;  %v5740_v38 = vld [vmem:[%s7743_s1 + $0xda0] ss:$16 sps:$4 sm:$0xff]   ;;  %v5743_v21 = vld [vmem:[%s7743_s1 + $0xda8] ss:$16 sps:$4 sm:$0xff]   ;;  %v5754_v44 = vld [vmem:[%s7743_s1 + $0xde4] ss:$16 sps:$4 sm:$0xff]  }
 0x17d   :  { %vm4167_vm0 = vcmask 1041408   ;;  %vm4163_vm1 = vcmask 949248   ;;  %vm4276_vm2 = vcmask 1043456   ;;  %vm5914_vm3 = vmmov 0   ;;  %s5915_s9 = smov [#allocation2]  }
 0x17e   :  { %vm4272_vm4 = vcmask 818176   ;;  %s4357_s10 = sshll.u32 %s5915_s9, 4  ;;  %s4358_s10 = int_to_ptr.vmem [resolvable:$true] %s4357_s10 }
 0x17f   :  { %3476 = vmatpush1.bf16.msra.mxu0 %v5656_v40  ;;  %3804 = vmatpush1.bf16.msra.mxu1 %v5659_v27  ;;  %v5748_v40 = vld [vmem:[%s7743_s1 + $0xdc4] ss:$16 sps:$4 sm:$0xff]   ;;  %v5751_v27 = vld [vmem:[%s7743_s1 + $0xdcc] ss:$16 sps:$4 sm:$0xff]   ;;  %p5892_p1 = scmp.lt.s32.totalorder %s4358_s10, %s4358_s10 }
 0x180   :  { %3486 = vmatprep.subr.bf16.mxu0 %v5664_v41  ;;  %3814 = vmatprep.subr.bf16.mxu1 %v5667_v43  ;;  %v5746_v41 = vld [vmem:[%s7743_s1 + $0xdc0] ss:$16 sps:$4 sm:$0xff]   ;;  %v5749_v43 = vld [vmem:[%s7743_s1 + $0xdc8] ss:$16 sps:$4 sm:$0xff]  }
 0x182   :  { %3478 = vmatmul.mubr.bf16.vlgmr.msra.gmra.mrb[0].mxu0 %v660_v35  ;;  %3806 = vmatmul.mubr.bf16.vlgmr.msra.gmra.mrb[0].mxu1 %v660_v35  ;;  %v5757_v35 = vld [vmem:[%s7743_s1 + $0xdec] ss:$16 sps:$4 sm:$0xff]  }
 0x183   :  { %3487 = vmatpush1.bf16.msra.mxu0 %v5662_v45  ;;  %3815 = vmatpush1.bf16.msra.mxu1 %v5665_v46  ;;  %v5752_v45 = vld [vmem:[%s7743_s1 + $0xde0] ss:$16 sps:$4 sm:$0xff]   ;;  %v5755_v46 = vld [vmem:[%s7743_s1 + $0xde8] ss:$16 sps:$4 sm:$0xff]  }
 0x184   :  { %3488 = vmatprep.subr.bf16.mxu0 %v5670_v47  ;;  %3816 = vmatprep.subr.bf16.mxu1 %v5673_v37  ;;  %v5761_v47 = vld [vmem:[%s7743_s1 + $0xe04] ss:$16 sps:$4 sm:$0xff]   ;;  %v5764_v37 = vld [vmem:[%s7743_s1 + $0xe0c] ss:$16 sps:$4 sm:$0xff]  }
 0x185   :  { %3518 = vmatprep.mubr.bf16.mxu0 %v7202_v48  ;;  %3846 = vmatprep.mubr.bf16.mxu1 %v7202_v48 }
 0x187   :  { %3489 = vmatpush1.bf16.msra.mxu0 %v5668_v50  ;;  %3817 = vmatpush1.bf16.msra.mxu1 %v5671_v51  ;;  %v7388_v50 = vrot.slane %v7171_v39, %v6091_v49  ;;  %v5759_v51 = vld [vmem:[%s7743_s1 + $0xe00] ss:$16 sps:$4 sm:$0xff]   ;;  %v5770_v49 = vld [vmem:[%s7743_s1 + $0xe2c] ss:$16 sps:$4 sm:$0xff]   ;;  %v663_v39 = vcombine.high %v7202_v48, %v7202_v48  ;;  %v5773_v48 = vld [vmem:[%s7743_s1 + $0xe44] ss:$16 sps:$4 sm:$0xff]  }
 0x188   :  { %3490 = vmatprep.subr.bf16.mxu0 %v5676_v53  ;;  %3818 = vmatprep.subr.bf16.mxu1 %v5679_v54  ;;  %v5762_v53 = vld [vmem:[%s7743_s1 + $0xe08] ss:$16 sps:$4 sm:$0xff]   ;;  %v5767_v54 = vld [vmem:[%s7743_s1 + $0xe24] ss:$16 sps:$4 sm:$0xff]  }
 0x18b   :  { %3491 = vmatpush1.bf16.msra.mxu0 %v5674_v55  ;;  %3819 = vmatpush1.bf16.msra.mxu1 %v5677_v56  ;;  %v5765_v55 = vld [vmem:[%s7743_s1 + $0xe20] ss:$16 sps:$4 sm:$0xff]   ;;  %v5768_v56 = vld [vmem:[%s7743_s1 + $0xe28] ss:$16 sps:$4 sm:$0xff]  }
 0x18c   :  { %3492 = vmatprep.subr.bf16.mxu0 %v5682_v57  ;;  %3820 = vmatprep.subr.bf16.mxu1 %v5685_v58  ;;  %v5776_v57 = vld [vmem:[%s7743_s1 + $0xe4c] ss:$16 sps:$4 sm:$0xff]   ;;  %v5771_v58 = vld [vmem:[%s7743_s1 + $0xe40] ss:$16 sps:$4 sm:$0xff]  }
 0x18f   :  { %3493 = vmatpush1.bf16.msra.mxu0 %v5680_v59  ;;  %3821 = vmatpush1.bf16.msra.mxu1 %v5683_v60  ;;  %v5774_v59 = vld [vmem:[%s7743_s1 + $0xe48] ss:$16 sps:$4 sm:$0xff]   ;;  %v5779_v60 = vld [vmem:[%s7743_s1 + $0xe64] ss:$16 sps:$4 sm:$0xff]  }
 0x190   :  { %3494 = vmatprep.subr.bf16.mxu0 %v5688_v61  ;;  %3822 = vmatprep.subr.bf16.mxu1 %v5691_v62  ;;  %v5782_v61 = vld [vmem:[%s7743_s1 + $0xe6c] ss:$16 sps:$4 sm:$0xff]   ;;  %v5777_v62 = vld [vmem:[%s7743_s1 + $0xe60] ss:$16 sps:$4 sm:$0xff]  }
 0x193   :  { %3495 = vmatpush1.bf16.msra.mxu0 %v5686_v63  ;;  %3823 = vmatpush1.bf16.msra.mxu1 %v5689_v0  ;;  %v5780_v63 = vld [vmem:[%s7743_s1 + $0xe68] ss:$16 sps:$4 sm:$0xff]   ;;  %v5785_v0 = vld [vmem:[%s7743_s1 + $0xe84] ss:$16 sps:$4 sm:$0xff]  }
 0x194   :  { %3496 = vmatprep.subr.bf16.mxu0 %v5694_v1  ;;  %3824 = vmatprep.subr.bf16.mxu1 %v5697_v2  ;;  %v5788_v1 = vld [vmem:[%s7743_s1 + $0xe8c] ss:$16 sps:$4 sm:$0xff]   ;;  %v5783_v2 = vld [vmem:[%s7743_s1 + $0xe80] ss:$16 sps:$4 sm:$0xff]  }
 0x197   :  { %3497 = vmatpush1.bf16.msra.mxu0 %v5692_v3  ;;  %3825 = vmatpush1.bf16.msra.mxu1 %v5695_v4  ;;  %v5786_v3 = vld [vmem:[%s7743_s1 + $0xe88] ss:$16 sps:$4 sm:$0xff]   ;;  %v5791_v4 = vld [vmem:[%s7743_s1 + $0xea4] ss:$16 sps:$4 sm:$0xff]  }
 0x198   :  { %3498 = vmatprep.subr.bf16.mxu0 %v5700_v5  ;;  %3826 = vmatprep.subr.bf16.mxu1 %v5703_v6  ;;  %v5794_v5 = vld [vmem:[%s7743_s1 + $0xeac] ss:$16 sps:$4 sm:$0xff]   ;;  %v5789_v6 = vld [vmem:[%s7743_s1 + $0xea0] ss:$16 sps:$4 sm:$0xff]  }
 0x19b   :  { %3499 = vmatpush1.bf16.msra.mxu0 %v5698_v7  ;;  %3827 = vmatpush1.bf16.msra.mxu1 %v5701_v8  ;;  %v5792_v7 = vld [vmem:[%s7743_s1 + $0xea8] ss:$16 sps:$4 sm:$0xff]   ;;  %v5797_v8 = vld [vmem:[%s7743_s1 + $0xec4] ss:$16 sps:$4 sm:$0xff]  }
 0x19c   :  { %3500 = vmatprep.subr.bf16.mxu0 %v5706_v9  ;;  %3828 = vmatprep.subr.bf16.mxu1 %v5709_v10  ;;  %v5800_v9 = vld [vmem:[%s7743_s1 + $0xecc] ss:$16 sps:$4 sm:$0xff]   ;;  %v5795_v10 = vld [vmem:[%s7743_s1 + $0xec0] ss:$16 sps:$4 sm:$0xff]  }
 0x19f   :  { %3501 = vmatpush1.bf16.msra.mxu0 %v5704_v11  ;;  %3829 = vmatpush1.bf16.msra.mxu1 %v5707_v12  ;;  %v5798_v11 = vld [vmem:[%s7743_s1 + $0xec8] ss:$16 sps:$4 sm:$0xff]   ;;  %v5803_v12 = vld [vmem:[%s7743_s1 + $0xee4] ss:$16 sps:$4 sm:$0xff]  }
 0x1a0   :  { %3502 = vmatprep.subr.bf16.mxu0 %v5712_v52  ;;  %3830 = vmatprep.subr.bf16.mxu1 %v5715_v15  ;;  %v5806_v52 = vld [vmem:[%s7743_s1 + $0xeec] ss:$16 sps:$4 sm:$0xff]   ;;  %v5801_v15 = vld [vmem:[%s7743_s1 + $0xee0] ss:$16 sps:$4 sm:$0xff]  }
 0x1a3   :  { %3503 = vmatpush1.bf16.msra.mxu0 %v5710_v16  ;;  %3831 = vmatpush1.bf16.msra.mxu1 %v5713_v17  ;;  %v5804_v16 = vld [vmem:[%s7743_s1 + $0xee8] ss:$16 sps:$4 sm:$0xff]   ;;  %v5809_v17 = vld [vmem:[%s7743_s1 + $0xf04] ss:$16 sps:$4 sm:$0xff]  }
 0x1a4   :  { %3504 = vmatprep.subr.bf16.mxu0 %v5718_v18  ;;  %3832 = vmatprep.subr.bf16.mxu1 %v5721_v19  ;;  %v5812_v18 = vld [vmem:[%s7743_s1 + $0xf0c] ss:$16 sps:$4 sm:$0xff]   ;;  %v5807_v19 = vld [vmem:[%s7743_s1 + $0xf00] ss:$16 sps:$4 sm:$0xff]  }
 0x1a7   :  { %3505 = vmatpush1.bf16.msra.mxu0 %v5716_v20  ;;  %3833 = vmatpush1.bf16.msra.mxu1 %v5719_v22  ;;  %v5810_v20 = vld [vmem:[%s7743_s1 + $0xf08] ss:$16 sps:$4 sm:$0xff]   ;;  %v5815_v22 = vld [vmem:[%s7743_s1 + $0xf24] ss:$16 sps:$4 sm:$0xff]  }
 0x1a8   :  { %3506 = vmatprep.subr.bf16.mxu0 %v5724_v23  ;;  %3834 = vmatprep.subr.bf16.mxu1 %v5727_v24  ;;  %v5818_v23 = vld [vmem:[%s7743_s1 + $0xf2c] ss:$16 sps:$4 sm:$0xff]   ;;  %v5813_v24 = vld [vmem:[%s7743_s1 + $0xf20] ss:$16 sps:$4 sm:$0xff]  }
 0x1ab   :  { %3507 = vmatpush1.bf16.msra.mxu0 %v5722_v13  ;;  %3835 = vmatpush1.bf16.msra.mxu1 %v5725_v28  ;;  %v5816_v13 = vld [vmem:[%s7743_s1 + $0xf28] ss:$16 sps:$4 sm:$0xff]   ;;  %v5821_v28 = vld [vmem:[%s7743_s1 + $0xf44] ss:$16 sps:$4 sm:$0xff]  }
 0x1ac   :  { %3508 = vmatprep.subr.bf16.mxu0 %v5730_v29  ;;  %3836 = vmatprep.subr.bf16.mxu1 %v5733_v14  ;;  %v5824_v29 = vld [vmem:[%s7743_s1 + $0xf4c] ss:$16 sps:$4 sm:$0xff]   ;;  %v5819_v14 = vld [vmem:[%s7743_s1 + $0xf40] ss:$16 sps:$4 sm:$0xff]  }
 0x1af   :  { %3509 = vmatpush1.bf16.msra.mxu0 %v5728_v30  ;;  %3837 = vmatpush1.bf16.msra.mxu1 %v5731_v31  ;;  %v5822_v30 = vld [vmem:[%s7743_s1 + $0xf48] ss:$16 sps:$4 sm:$0xff]   ;;  %v5827_v31 = vld [vmem:[%s7743_s1 + $0xf64] ss:$16 sps:$4 sm:$0xff]  }
 0x1b0   :  { %3510 = vmatprep.subr.bf16.mxu0 %v5736_v25  ;;  %3838 = vmatprep.subr.bf16.mxu1 %v5739_v32  ;;  %v5830_v25 = vld [vmem:[%s7743_s1 + $0xf6c] ss:$16 sps:$4 sm:$0xff]   ;;  %v5825_v32 = vld [vmem:[%s7743_s1 + $0xf60] ss:$16 sps:$4 sm:$0xff]  }
 0x1b3   :  { %3511 = vmatpush1.bf16.msra.mxu0 %v5734_v33  ;;  %3839 = vmatpush1.bf16.msra.mxu1 %v5737_v34  ;;  %v5828_v33 = vld [vmem:[%s7743_s1 + $0xf68] ss:$16 sps:$4 sm:$0xff]   ;;  %v5833_v34 = vld [vmem:[%s7743_s1 + $0xf84] ss:$16 sps:$4 sm:$0xff]  }
 0x1b4   :  { %3512 = vmatprep.subr.bf16.mxu0 %v5742_v26  ;;  %3840 = vmatprep.subr.bf16.mxu1 %v5745_v36  ;;  %v5836_v26 = vld [vmem:[%s7743_s1 + $0xf8c] ss:$16 sps:$4 sm:$0xff]   ;;  %v5831_v36 = vld [vmem:[%s7743_s1 + $0xf80] ss:$16 sps:$4 sm:$0xff]  }
 0x1b7   :  { %3513 = vmatpush1.bf16.msra.mxu0 %v5740_v38  ;;  %3841 = vmatpush1.bf16.msra.mxu1 %v5743_v21  ;;  %v5834_v38 = vld [vmem:[%s7743_s1 + $0xf88] ss:$16 sps:$4 sm:$0xff]   ;;  %v5839_v21 = vld [vmem:[%s7743_s1 + $0xfa4] ss:$16 sps:$4 sm:$0xff]  }
 0x1b8   :  { %3514 = vmatprep.subr.bf16.mxu0 %v5748_v40  ;;  %3842 = vmatprep.subr.bf16.mxu1 %v5751_v27  ;;  %v5842_v40 = vld [vmem:[%s7743_s1 + $0xfac] ss:$16 sps:$4 sm:$0xff]   ;;  %v5837_v27 = vld [vmem:[%s7743_s1 + $0xfa0] ss:$16 sps:$4 sm:$0xff]  }
 0x1bb   :  { %3515 = vmatpush1.bf16.msra.mxu0 %v5746_v41  ;;  %3843 = vmatpush1.bf16.msra.mxu1 %v5749_v43  ;;  %v5840_v41 = vld [vmem:[%s7743_s1 + $0xfa8] ss:$16 sps:$4 sm:$0xff]   ;;  %v5845_v43 = vld [vmem:[%s7743_s1 + $0xfc4] ss:$16 sps:$4 sm:$0xff]  }
 0x1bc   :  { %3516 = vmatprep.subr.bf16.mxu0 %v5754_v44  ;;  %3844 = vmatprep.subr.bf16.mxu1 %v5757_v35  ;;  %v5848_v44 = vld [vmem:[%s7743_s1 + $0xfcc] ss:$16 sps:$4 sm:$0xff]   ;;  %v5843_v35 = vld [vmem:[%s7743_s1 + $0xfc0] ss:$16 sps:$4 sm:$0xff]  }
 0x1bf   :  { %3517 = vmatpush1.bf16.msra.mxu0 %v5752_v45  ;;  %3845 = vmatpush1.bf16.msra.mxu1 %v5755_v46  ;;  %v5846_v45 = vld [vmem:[%s7743_s1 + $0xfc8] ss:$16 sps:$4 sm:$0xff]   ;;  %v5851_v46 = vld [vmem:[%s7743_s1 + $0xfe4] ss:$16 sps:$4 sm:$0xff]  }
 0x1c0   :  { %3527 = vmatprep.subr.bf16.mxu0 %v5761_v47  ;;  %3855 = vmatprep.subr.bf16.mxu1 %v5764_v37  ;;  %v5854_v47 = vld [vmem:[%s7743_s1 + $0xfec] ss:$16 sps:$4 sm:$0xff]   ;;  %v5849_v37 = vld [vmem:[%s7743_s1 + $0xfe0] ss:$16 sps:$4 sm:$0xff]  }
 0x1c2   :  { %3519 = vmatmul.mubr.bf16.vlgmr.msra.gmra.mrb[0].mxu0 %v7388_v50  ;;  %3847 = vmatmul.mubr.bf16.vlgmr.msra.gmra.mrb[0].mxu1 %v7388_v50 }
 0x1c3   :  { %3528 = vmatpush1.bf16.msra.mxu0 %v5759_v51  ;;  %3856 = vmatpush1.bf16.msra.mxu1 %v5762_v53  ;;  %v5852_v51 = vld [vmem:[%s7743_s1 + $0xfe8] ss:$16 sps:$4 sm:$0xff]   ;;  %v5855_v53 = vld [vmem:[%s7745_s3 + $0x40] sm:$0xff]  }
 0x1c4   :  { %3529 = vmatprep.subr.bf16.mxu0 %v5767_v54  ;;  %3857 = vmatprep.subr.bf16.mxu1 %v5770_v49  ;;  %v5856_v54 = vld [vmem:[%s7745_s3 + $0xc0] sm:$0xff]   ;;  %v661_v49 = vcombine.high %v7388_v50, %v7388_v50  ;;  %v5860_v50 = vld [vmem:[%s7745_s3 + $0xc8] sm:$0xff]  }
 0x1c5   :  { %3559 = vmatprep.mubr.bf16.mxu0 %v663_v39  ;;  %3887 = vmatprep.mubr.bf16.mxu1 %v663_v39  ;;  %v5857_v39 = vld [vmem:[%s7745_s3] sm:$0xff]  }
 0x1c7   :  { %3530 = vmatpush1.bf16.msra.mxu0 %v5765_v55  ;;  %3858 = vmatpush1.bf16.msra.mxu1 %v5768_v56  ;;  %v5858_v55 = vld [vmem:[%s7745_s3 + $0x80] sm:$0xff]   ;;  %v5859_v56 = vld [vmem:[%s7745_s3 + $0x48] sm:$0xff]  }
 0x1c8   :  { %3531 = vmatprep.subr.bf16.mxu0 %v5773_v48  ;;  %3859 = vmatprep.subr.bf16.mxu1 %v5776_v57  ;;  %v5861_v48 = vld [vmem:[%s7745_s3 + $0x8] sm:$0xff]  }
 0x1c9   :  { %v5862_v57 = vld [vmem:[%s7745_s3 + $0x88] sm:$0xff]  }
 0x1cb   :  { %3532 = vmatpush1.bf16.msra.mxu0 %v5771_v58  ;;  %3860 = vmatpush1.bf16.msra.mxu1 %v5774_v59  ;;  %v5863_v58 = vld [vmem:[%s7745_s3 + $0x50] sm:$0xff]  }
 0x1cc   :  { %3533 = vmatprep.subr.bf16.mxu0 %v5779_v60  ;;  %3861 = vmatprep.subr.bf16.mxu1 %v5782_v61  ;;  %v5864_v59 = vld [vmem:[%s7745_s3 + $0xd0] sm:$0xff]  }
 0x1cd   :  { %v5865_v60 = vld [vmem:[%s7745_s3 + $0x10] sm:$0xff]  }
 0x1ce   :  { %v5866_v61 = vld [vmem:[%s7745_s3 + $0x90] sm:$0xff]  }
 0x1cf   :  { %3534 = vmatpush1.bf16.msra.mxu0 %v5777_v62  ;;  %3862 = vmatpush1.bf16.msra.mxu1 %v5780_v63  ;;  %v5867_v62 = vld [vmem:[%s7745_s3 + $0x58] sm:$0xff]  }
 0x1d0   :  { %3535 = vmatprep.subr.bf16.mxu0 %v5785_v0  ;;  %3863 = vmatprep.subr.bf16.mxu1 %v5788_v1  ;;  %v5868_v63 = vld [vmem:[%s7745_s3 + $0xd8] sm:$0xff]  }
 0x1d1   :  { %v5869_v0 = vld [vmem:[%s7745_s3 + $0x18] sm:$0xff]  }
 0x1d2   :  { %v5870_v1 = vld [vmem:[%s7745_s3 + $0x98] sm:$0xff]  }
 0x1d3   :  { %3536 = vmatpush1.bf16.msra.mxu0 %v5783_v2  ;;  %3864 = vmatpush1.bf16.msra.mxu1 %v5786_v3  ;;  %v5871_v2 = vld [vmem:[%s7745_s3 + $0x60] sm:$0xff]  }
 0x1d4   :  { %3537 = vmatprep.subr.bf16.mxu0 %v5791_v4  ;;  %3865 = vmatprep.subr.bf16.mxu1 %v5794_v5  ;;  %v5872_v3 = vld [vmem:[%s7745_s3 + $0xe0] sm:$0xff]  }
 0x1d5   :  { %v5873_v4 = vld [vmem:[%s7745_s3 + $0x20] sm:$0xff]  }
 0x1d6   :  { %v5874_v5 = vld [vmem:[%s7745_s3 + $0xa0] sm:$0xff]  }
 0x1d7   :  { %3538 = vmatpush1.bf16.msra.mxu0 %v5789_v6  ;;  %3866 = vmatpush1.bf16.msra.mxu1 %v5792_v7  ;;  %v5875_v6 = vld [vmem:[%s7745_s3 + $0x68] sm:$0xff]  }
 0x1d8   :  { %3539 = vmatprep.subr.bf16.mxu0 %v5797_v8  ;;  %3867 = vmatprep.subr.bf16.mxu1 %v5800_v9  ;;  %v5876_v7 = vld [vmem:[%s7745_s3 + $0xe8] sm:$0xff]  }
 0x1d9   :  { %v5877_v8 = vld [vmem:[%s7745_s3 + $0x28] sm:$0xff]  }
 0x1da   :  { %v5878_v9 = vld [vmem:[%s7745_s3 + $0xa8] sm:$0xff]  }
 0x1db   :  { %3540 = vmatpush1.bf16.msra.mxu0 %v5795_v10  ;;  %3868 = vmatpush1.bf16.msra.mxu1 %v5798_v11  ;;  %v5879_v10 = vld [vmem:[%s7745_s3 + $0x70] sm:$0xff]  }
 0x1dc   :  { %3541 = vmatprep.subr.bf16.mxu0 %v5803_v12  ;;  %3869 = vmatprep.subr.bf16.mxu1 %v5806_v52  ;;  %v5880_v11 = vld [vmem:[%s7745_s3 + $0xf0] sm:$0xff]  }
 0x1dd   :  { %v5881_v12 = vld [vmem:[%s7745_s3 + $0x30] sm:$0xff]  }
 0x1de   :  { %v5882_v52 = vld [vmem:[%s7745_s3 + $0xb0] sm:$0xff]  }
 0x1df   :  { %3542 = vmatpush1.bf16.msra.mxu0 %v5801_v15  ;;  %3870 = vmatpush1.bf16.msra.mxu1 %v5804_v16  ;;  %v5883_v15 = vld [vmem:[%s7745_s3 + $0x78] sm:$0xff]  }
 0x1e0   :  { %3543 = vmatprep.subr.bf16.mxu0 %v5809_v17  ;;  %3871 = vmatprep.subr.bf16.mxu1 %v5812_v18  ;;  %v5884_v16 = vld [vmem:[%s7745_s3 + $0xf8] ss:$0 sps:$4 sm:$0x33]  }
 0x1e1   :  { %v5885_v17 = vld [vmem:[%s7745_s3 + $0x38] sm:$0xff]  }
 0x1e2   :  { %v5886_v18 = vld [vmem:[%s7745_s3 + $0xb8] sm:$0xff]  }
 0x1e3   :  { %3544 = vmatpush1.bf16.msra.mxu0 %v5807_v19  ;;  %3872 = vmatpush1.bf16.msra.mxu1 %v5810_v20  ;;  %v5912_v19 = vmov 0.0|0.0   ;;  %v546_v20 = vsub.s32 0, %v6073_v42 }
 0x1e4   :  { %3545 = vmatprep.subr.bf16.mxu0 %v5815_v22  ;;  %3873 = vmatprep.subr.bf16.mxu1 %v5818_v23  ;;  %v554_v22 = vsub.s32 2, %v6073_v42  ;;  %v542_v23 = vld [vmem:[%s7744_s2] sm:$0xf] }
 0x1e7   :  { %3546 = vmatpush1.bf16.msra.mxu0 %v5813_v24  ;;  %3874 = vmatpush1.bf16.msra.mxu1 %v5816_v13  ;;  %v550_v24 = vsub.s32 1, %v6073_v42  ;;  %v558_v13 = vsub.s32 3, %v6073_v42  ;;  %v4252_v42 = vld [vmem:[%s7747_s5] sm:$0xff] }
 0x1e8   :  { %3547 = vmatprep.subr.bf16.mxu0 %v5821_v28  ;;  %3875 = vmatprep.subr.bf16.mxu1 %v5824_v29  ;;  %v547_v28 = vrot.slane %v542_v23, %v546_v20  ;;  %v555_v29 = vrot.slane %v542_v23, %v554_v22 }
 0x1eb   :  { %3548 = vmatpush1.bf16.msra.mxu0 %v5819_v14  ;;  %3876 = vmatpush1.bf16.msra.mxu1 %v5822_v30  ;;  %v551_v14 = vrot.slane %v542_v23, %v550_v24  ;;  %v559_v30 = vrot.slane %v542_v23, %v558_v13 }
 0x1ec   :  { %3549 = vmatprep.subr.bf16.mxu0 %v5827_v31  ;;  %3877 = vmatprep.subr.bf16.mxu1 %v5830_v25 }
 0x1ef   :  { %3550 = vmatpush1.bf16.msra.mxu0 %v5825_v32  ;;  %3878 = vmatpush1.bf16.msra.mxu1 %v5828_v33 }
 0x1f0   :  { %3551 = vmatprep.subr.bf16.mxu0 %v5833_v34  ;;  %3879 = vmatprep.subr.bf16.mxu1 %v5836_v26 }
 0x1f3   :  { %3552 = vmatpush1.bf16.msra.mxu0 %v5831_v36  ;;  %3880 = vmatpush1.bf16.msra.mxu1 %v5834_v38 }
 0x1f4   :  { %3553 = vmatprep.subr.bf16.mxu0 %v5839_v21  ;;  %3881 = vmatprep.subr.bf16.mxu1 %v5842_v40 }
 0x1f7   :  { %3554 = vmatpush1.bf16.msra.mxu0 %v5837_v27  ;;  %3882 = vmatpush1.bf16.msra.mxu1 %v5840_v41 }
 0x1f8   :  { %3555 = vmatprep.subr.bf16.mxu0 %v5845_v43  ;;  %3883 = vmatprep.subr.bf16.mxu1 %v5848_v44 }
 0x1fb   :  { %3556 = vmatpush1.bf16.msra.mxu0 %v5843_v35  ;;  %3884 = vmatpush1.bf16.msra.mxu1 %v5846_v45  ;;  %v4253_v35 = vld [vmem:[%s7747_s5 + $0x8] sm:$0xff] }
 0x1fc   :  { %3557 = vmatprep.subr.bf16.mxu0 %v5851_v46  ;;  %3885 = vmatprep.subr.bf16.mxu1 %v5854_v47 }
 0x1ff   :  { %3558 = vmatpush1.bf16.msra.mxu0 %v5849_v37  ;;  %3886 = vmatpush1.bf16.msra.mxu1 %v5852_v51  ;;  %v5002_v51 = vpack.c.bf16 %v4253_v35, %v4252_v42 }
 0x200   :  { %4914 = vmatprep.subr.bf16.mxu0 %v5855_v53  ;;  %4936 = vmatprep.subr.bf16.mxu1 %v5856_v54 }
 0x202   :  { %3560 = vmatmul.mubr.bf16.vlgmr.msra.gmra.mrb[0].mxu0 %v661_v49  ;;  %3888 = vmatmul.mubr.bf16.vlgmr.msra.gmra.mrb[0].mxu1 %v661_v49  ;;  %v4254_v49 = vld [vmem:[%s7747_s5 + $0x10] sm:$0xff] }
 0x203   :  { %4915 = vmatpush3.bf16.msra.mxu0 %v5857_v39  ;;  %4937 = vmatpush3.bf16.msra.mxu1 %v5858_v55  ;;  %v4255_v39 = vld [vmem:[%s7747_s5 + $0x18] sm:$0xff] }
 0x204   :  { %4916 = vmatprep.subr.bf16.mxu0 %v5859_v56  ;;  %4938 = vmatprep.subr.bf16.mxu1 %v5860_v50  ;;  %v5005_v55 = vpack.c.bf16 %v4255_v39, %v4254_v49  ;;  %v4256_v56 = vld [vmem:[%s7747_s5 + $0x20] sm:$0xff]  ;;  %v4257_v50 = vld [vmem:[%s7747_s5 + $0x28] sm:$0xff] }
 0x207   :  { %4917 = vmatpush3.bf16.msra.mxu0 %v5861_v48  ;;  %4939 = vmatpush3.bf16.msra.mxu1 %v5862_v57  ;;  %v5008_v48 = vpack.c.bf16 %v4257_v50, %v4256_v56  ;;  %v4258_v57 = vld [vmem:[%s7747_s5 + $0x30] sm:$0xff] }
 0x208   :  { %4918 = vmatprep.subr.bf16.mxu0 %v5863_v58  ;;  %4940 = vmatprep.subr.bf16.mxu1 %v5864_v59  ;;  %v4259_v58 = vld [vmem:[%s7747_s5 + $0x38] sm:$0xff] }
 0x209   :  { %v5011_v59 = vpack.c.bf16 %v4259_v58, %v4258_v57 }
 0x20b   :  { %4919 = vmatpush3.bf16.msra.mxu0 %v5865_v60  ;;  %4941 = vmatpush3.bf16.msra.mxu1 %v5866_v61  ;;  %v4260_v60 = vld [vmem:[%s7747_s5 + $0x40] sm:$0xff]  ;;  %v4261_v61 = vld [vmem:[%s7747_s5 + $0x48] sm:$0xff] }
 0x20c   :  { %4920 = vmatprep.subr.bf16.mxu0 %v5867_v62  ;;  %4942 = vmatprep.subr.bf16.mxu1 %v5868_v63  ;;  %v5014_v62 = vpack.c.bf16 %v4261_v61, %v4260_v60  ;;  %v4262_v63 = vld [vmem:[%s7747_s5 + $0x50] sm:$0xff] }
 0x20f   :  { %4921 = vmatpush3.bf16.msra.mxu0 %v5869_v0  ;;  %4943 = vmatpush3.bf16.msra.mxu1 %v5870_v1  ;;  %v4263_v0 = vld [vmem:[%s7747_s5 + $0x58] sm:$0xff] }
 0x210   :  { %4922 = vmatprep.subr.bf16.mxu0 %v5871_v2  ;;  %4944 = vmatprep.subr.bf16.mxu1 %v5872_v3  ;;  %v5017_v1 = vpack.c.bf16 %v4263_v0, %v4262_v63  ;;  %v5913_v2 = vmov 0.0   ;;  %v4264_v3 = vld [vmem:[%s7747_s5 + $0x60] sm:$0xf] }
 0x213   :  { %4923 = vmatpush3.bf16.msra.mxu0 %v5873_v4  ;;  %4945 = vmatpush3.bf16.msra.mxu1 %v5874_v5 }
 0x214   :  { %4924 = vmatprep.subr.bf16.mxu0 %v5875_v6  ;;  %4946 = vmatprep.subr.bf16.mxu1 %v5876_v7  ;;  %v4877_v6 = vld [vmem:[%s7746_s4] ss:$0 sm:$0xff]  ;;  %s5887_s4 = scalar_lea.vmem %s4358_s10, 32 }
 0x215   :  { %p5888_p0 = scmp.ne.s32.totalorder %s4358_s10, %s5887_s4  ;;  %p5893_p2 = scmp.lt.s32.totalorder %s5887_s4, %s5887_s4 }
 0x217   :  { %4925 = vmatpush3.bf16.msra.mxu0 %v5877_v8  ;;  %4947 = vmatpush3.bf16.msra.mxu1 %v5878_v9  ;;  %p5894_p3 = por %p5893_p2, %p5892_p1 }
 0x218   :  { %4926 = vmatprep.subr.bf16.mxu0 %v5879_v10  ;;  %4948 = vmatprep.subr.bf16.mxu1 %v5880_v11 }
 0x219   :  { %p5895_p4 = pnand %p5894_p3, %p5888_p0 }
 0x21b   :  { %4927 = vmatpush3.bf16.msra.mxu0 %v5881_v12  ;;  %4949 = vmatpush3.bf16.msra.mxu1 %v5882_v52 }
 0x21c   :  { %4928 = vmatprep.subr.bf16.mxu0 %v5883_v15  ;;  %5079 = vmatprep.subr.msk.bf16.mxu1 %vm4167_vm0, %v5884_v16 }
 0x21f   :  { %4929 = vmatpush3.bf16.msra.mxu0 %v5885_v17  ;;  %4951 = vmatpush3.bf16.msra.mxu1 %v5886_v18 }
 0x220   :  { %5001 = vmatprep.subr.bf16.mxu0 %v5912_v19 }
 0x2d5   :  { %v3561_v31 = vpop.f32.mrb[0].mxu0  ;;  %v3889_v25 = vpop.f32.mrb[0].mxu1 }
 0x2d6   :  { %v5019_v32 = vadd.f32 %v3561_v31, %v547_v28  ;;  %v5021_v33 = vadd.f32 %v3889_v25, %v555_v29  ;;  %v3563_v34 = vpop.f32.mrb[1].mxu0  ;;  %v3891_v26 = vpop.f32.mrb[1].mxu1 }
 0x2d7   :  { %v5020_v36 = vadd.f32 %v3563_v34, %v551_v14  ;;  %v5022_v38 = vadd.f32 %v3891_v26, %v559_v30  ;;  %v3565_v21 = vpop.f32.mrb[2].mxu0  ;;  %v3893_v40 = vpop.f32.mrb[2].mxu1 }
 0x2d8   :  { %v3896_v27 = vmax.f32 %v5019_v32, 0.0  ;;  %v3898_v41 = vmax.f32 %v5021_v33, 0.0  ;;  %v3566_v43 = vpop.f32.mrb[3].mxu0  ;;  %v3894_v44 = vpop.f32.mrb[3].mxu1 }
 0x2d9   :  { %v3897_v45 = vmax.f32 %v5020_v36, 0.0  ;;  %v3899_v46 = vmax.f32 %v5022_v38, 0.0 }
 0x2da   :  { %v3900_v53 = vpack.c.bf16 %v3896_v27, %v3896_v27  ;;  %v3902_v54 = vpack.c.bf16 %v3898_v41, %v3898_v41 }
 0x2db   :  { %v3901_v47 = vpack.c.bf16 %v3897_v45, %v3897_v45  ;;  %v3903_v37 = vpack.c.bf16 %v3899_v46, %v3899_v46 }
 0x2dd   :  { %4203 = vmatprep.mubr.bf16.mxu0 %v3901_v47  ;;  %4910 = vmatprep.mubr.msk.bf16.mxu1 %vm4163_vm1, %v3903_v37 }
 0x2de   :  { %4204 = vmatmul.mubr.bf16.vlgmr.msra.gmra.mrb[4].mxu0 %v3900_v53  ;;  %4244 = vmatmul.mubr.bf16.vlgmr.msra.gmra.mrb[4].mxu1 %v3902_v54 }
 0x2df   :  { %5003 = vmatpush3.bf16.msra.mxu0 %v5002_v51  ;;  %4998 = vmatprep.mubr.msk.f32.mxu0 %vm5914_vm3, %v5913_v2 }
 0x2e0   :  { %5004 = vmatprep.subr.bf16.mxu0 %v5912_v19 }
 0x2e3   :  { %5006 = vmatpush3.bf16.msra.mxu0 %v5005_v55 }
 0x2e4   :  { %5007 = vmatprep.subr.bf16.mxu0 %v5912_v19 }
 0x2e7   :  { %5009 = vmatpush3.bf16.msra.mxu0 %v5008_v48 }
 0x2e8   :  { %5010 = vmatprep.subr.bf16.mxu0 %v5912_v19 }
 0x2eb   :  { %5012 = vmatpush3.bf16.msra.mxu0 %v5011_v59 }
 0x2ec   :  { %5013 = vmatprep.subr.bf16.mxu0 %v5912_v19 }
 0x2ef   :  { %5015 = vmatpush3.bf16.msra.mxu0 %v5014_v62 }
 0x2f0   :  { %5016 = vmatprep.subr.bf16.mxu0 %v5912_v19  ;;  %v4911_v19 = vld [vmem:[%s7748_s6] ss:$0 sm:$0xff] }
 0x2f3   :  { %5018 = vmatpush3.bf16.msra.mxu0 %v5017_v1 }
 0x2f4   :  { %4996 = vmatprep.subr.mxu0 %v5913_v2 }
 0x2f7   :  { %4997 = vmatpush3.msk.msra.mxu0 %vm4276_vm2, %v4264_v3 }
 0x3b1   :  { %v4930_v4 = vpop.f32.mrb[4].mxu0  ;;  %v4952_v5 = vpop.f32.mrb[4].mxu1 }
 0x3b2   :  { %v4931_v7 = vpop.f32.mrb[5].mxu0  ;;  %v4953_v8 = vpop.f32.mrb[5].mxu1 }
 0x3b3   :  { %v4932_v9 = vadd.f32 %v4931_v7, %v4930_v4  ;;  %v4954_v10 = vadd.f32 %v4953_v8, %v4952_v5  ;;  %v4933_v11 = vpop.f32.mrb[6].mxu0  ;;  %v4955_v12 = vpop.f32.mrb[6].mxu1 }
 0x3b4   :  { %v4934_v52 = vpop.f32.mrb[7].mxu0  ;;  %v4956_v15 = vpop.f32.mrb[7].mxu1 }
 0x3b5   :  { %v4206_v16 = vadd.f32 %v4932_v9, %v4877_v6 }
 0x3b7   :  { %v4246_v17 = vadd.f32 %v4954_v10, %v4206_v16 }
 0x3b9   :  { %v4251_v18 = vmax.f32 %v4246_v17, 0.0 }
 0x3bb   :  { %4999 = vmatmul.mubr.msk.f32.vlgmr.msra.gmra.mrb[8].mxu0 %vm4272_vm4, %v4251_v18 }
 0x48e   :  { %v4346_v20 = vpop.f32.mrb[8].mxu0 }
 0x48f   :  { %v4347_v22 = vadd.f32 %v4911_v19, %v4346_v20  ;;  %v5000_v23 = vpop.f32.mrb[9].mxu0 }
 0x491   :  { %4350 = vst [vmem:[#allocation2] sm:$0x3] %v4347_v22 }
 0x492   :  { %5898 = shalt.err (!%p5895_p4)
}
 0x493   :  { %s5899_s13 = scalar_lea.hbm %s7749_s7, 32 }
 0x494   :  { %p5900_p5 = scmp.ne.s32.totalorder %s7749_s7, %s5899_s13  ;;  %p5903_p6 = scmp.lt.u32.totalorder %s5899_s13, %s7749_s7 }
 0x496   :  { %p5905_p7 = pnand %p5903_p6, %p5900_p5 }
 0x498   :  { %5908 = shalt.err (!%p5905_p7)
}
 0x499   :  { %4360 = dma.vmem_to_hbm [thread:$0]  %s4358_s10, 32, %s7749_s7, [#allocation3]  }
 0x49a   :  { %5909 = dma.done.wait [#allocation3], 32  }
 0x49b   :  { %5910 = vsyncadd [#allocation3], 4294967264 }
 0x49c   :  { %4364 = vsyncpa [#allocation3], 1 }

</bundles_post_ra>
